<compile_context>
chip_gen: v5e
topology: v5e:2x2
jax: 0.10.0
libtpu: 0.0.40
codegen_flags: <defaults>
</compile_context>

<pallas_src>
import jax
import jax.numpy as jnp
from jax.experimental import pallas as pl
from jax.experimental.pallas import tpu as pltpu

# Small hyperparameters consistent with the module (scaled down from defaults).
D_MODEL = 32
NHEAD = 4
HEAD_DIM = D_MODEL // NHEAD
DIM_FF = 64
NUM_LAYERS = 2
SEQ = 8
BATCH = 2
LN_EPS = 1e-5

_NT = (((1,), (1,)), ((), ()))   # A (m,d) x B (n,d) -> (m,n): contract last dims


# ----------------------------- kernel ----------------------------------------
def _layernorm(x, w, b):
    mu = jnp.mean(x, axis=-1, keepdims=True)
    var = jnp.mean((x - mu) * (x - mu), axis=-1, keepdims=True)
    return (x - mu) * jax.lax.rsqrt(var + LN_EPS) * w + b


def fused_transformer_kernel(x_ref, pos_ref, mask_ref, hmask_ref,
                             wqk_ref, bqk_ref, wv_ref, wo_ref,
                             w1_ref, b1_ref, w2_ref, vec32_ref, fn_ref,
                             o_ref):
    """All decoder layers + final norm in one invocation.  x: (BATCH*SEQ, D_MODEL)."""
    x = x_ref[...]                 # (R, D), R = BATCH*SEQ
    pos = pos_ref[...]             # (R, D)
    amask = mask_ref[...]          # (R, R) additive causal + block-diagonal batch mask

    for l in range(NUM_LAYERS):    # static unroll over layers
        bv = vec32_ref[l, 0:1, :]
        bo = vec32_ref[l, 1:2, :]
        b2 = vec32_ref[l, 2:3, :]
        n1w = vec32_ref[l, 3:4, :]
        n1b = vec32_ref[l, 4:5, :]
        n3w = vec32_ref[l, 5:6, :]
        n3b = vec32_ref[l, 6:7, :]

        # ---------------- self-attention (query/key carry pos embed) ----------
        qk_in = x + pos
        qk = jnp.dot(qk_in, wqk_ref[l],
                     preferred_element_type=jnp.float32) + bqk_ref[l]   # (R, 2D)
        q = qk[:, :D_MODEL]        # scale already folded into Wq / bq
        k = qk[:, D_MODEL:]
        v = jnp.dot(x, wv_ref[l], preferred_element_type=jnp.float32) + bv

        acc = jnp.zeros((BATCH * SEQ, D_MODEL), jnp.float32)
        for h in range(NHEAD):                     # static unroll over heads
            hm = hmask_ref[h]                      # (1, D): 1.0 on head-h columns
            s = jax.lax.dot_general(q, k * hm, _NT,
                                    preferred_element_type=jnp.float32) + amask
            s = s - jnp.max(s, axis=-1, keepdims=True)
            p = jnp.exp(s)
            p = p * pl.reciprocal(jnp.sum(p, axis=-1, keepdims=True), approx=True)
            # masked-V head outputs occupy disjoint column ranges -> their sum over
            # heads equals the concatenated head output; Wo applied once below.
            acc = acc + jnp.dot(p, v * hm, preferred_element_type=jnp.float32)
        attn = jnp.dot(acc, wo_ref[l], preferred_element_type=jnp.float32) + bo

        # norm_first=False:  x = norm1(x + sa(x));  x = norm3(x + ff(x))
        y = _layernorm(x + attn, n1w, n1b)

        # ---------------- feed-forward ----------------------------------------
        h1 = jnp.maximum(
            jnp.dot(y, w1_ref[l], preferred_element_type=jnp.float32) + b1_ref[l], 0.0)
        ff = jnp.dot(h1, w2_ref[l], preferred_element_type=jnp.float32) + b2
        x = _layernorm(y + ff, n3w, n3b)

    # final LayerNorm of the stack
    o_ref[...] = _layernorm(x, fn_ref[0:1, :], fn_ref[1:2, :])


# ----------------------------- wrapper ----------------------------------------
def causal_transformer_forward(src, mask, pos_embed, kp):
    """src: (bs, hw, c); mask: (hw, hw) additive float; pos_embed: (hw, 1, c)."""
    bs, S, D = src.shape
    assert (bs, S, D) == (BATCH, SEQ, D_MODEL)
    x2 = src.reshape(bs * S, D)                       # batch-major rows
    pos2 = jnp.tile(pos_embed[:, 0, :], (bs, 1))      # "repeat over batch"
    # Block-diagonal additive mask over the collapsed batch*seq rows: provided (S, S)
    # mask in each diagonal block, -1e9 cross-batch, so both batch elements' attention
    # runs in one slab of matmuls without mixing.
    rows = jnp.arange(bs * S)
    same_batch = (rows[:, None] // S) == (rows[None, :] // S)
    bigmask = jnp.where(same_batch, jnp.tile(mask, (bs, bs)),
                        jnp.float32(-1e9)).astype(jnp.float32)

    args = [x2, pos2, bigmask, kp["head_mask"],
            kp["wqk"], kp["bqk"], kp["wv"], kp["wo"],
            kp["w1"], kp["b1"], kp["w2"], kp["vec32"], kp["fn"]]
    in_specs = [pl.BlockSpec(a.shape, lambda i, nd=a.ndim: (0,) * nd) for a in args]
    out = pl.pallas_call(
        fused_transformer_kernel,
        out_shape=jax.ShapeDtypeStruct((bs * S, D), jnp.float32),
        grid=(1,),                                     # everything fused in one step
        in_specs=in_specs,
        out_specs=pl.BlockSpec((bs * S, D), lambda i: (0, 0)),
        compiler_params=pltpu.CompilerParams(dimension_semantics=("arbitrary",)),
    )(*args)
    # TODO(synk): output is written as a (B*S, 32)-wide block (25% lane occupancy);
    # at 2 KiB written once per forward this is negligible, so no relayout is done.
    return out.reshape(bs, S, D)


# ----------------------------- parameters ------------------------------------
def _xavier(key, shape):
    fan_out, fan_in = shape
    lim = (6.0 / (fan_in + fan_out)) ** 0.5
    return jax.random.uniform(key, shape, jnp.float32, -lim, lim)


def init_torch_params(key):
    """PyTorch-layout parameters (MultiheadAttention in_proj / out_proj, Linear, LN)."""
    layers = []
    for _ in range(NUM_LAYERS):
        keys = jax.random.split(key, 9)
        key = keys[0]
        layers.append({
            "in_proj_w": _xavier(keys[1], (3 * D_MODEL, D_MODEL)),
            "in_proj_b": jax.random.uniform(keys[2], (3 * D_MODEL,), jnp.float32, -0.01, 0.01),
            "out_w": _xavier(keys[3], (D_MODEL, D_MODEL)),
            "out_b": jnp.zeros((D_MODEL,), jnp.float32),
            "w1": _xavier(keys[4], (DIM_FF, D_MODEL)),
            "b1": jax.random.uniform(keys[5], (DIM_FF,), jnp.float32, -0.01, 0.01),
            "w2": _xavier(keys[6], (D_MODEL, DIM_FF)),
            "b2": jax.random.uniform(keys[7], (D_MODEL,), jnp.float32, -0.01, 0.01),
            "n1w": jnp.ones((D_MODEL,), jnp.float32),
            "n1b": jnp.zeros((D_MODEL,), jnp.float32),
            "n3w": jnp.ones((D_MODEL,), jnp.float32),
            "n3b": jnp.zeros((D_MODEL,), jnp.float32),
        })
    return {"layers": layers,
            "norm_w": jnp.ones((D_MODEL,), jnp.float32),
            "norm_b": jnp.zeros((D_MODEL,), jnp.float32)}


def pack_params(raw):
    """One-time repack of PyTorch-layout weights into stacked, kernel-ready arrays.

    * Wq|Wk fused into (D, 2D); 1/sqrt(head_dim) folded into Wq, bq.
    * All per-layer arrays stacked along a leading layer axis.
    * Per-layer (1, D) vectors packed into one (L, 7, D) slab:
        rows = [bv, bo, b2, n1w, n1b, n3w, n3b].
    """
    scale = 1.0 / (HEAD_DIM ** 0.5)
    wqk, bqk, wv, wo, w1, b1, w2, vec32 = [], [], [], [], [], [], [], []
    for lp in raw["layers"]:
        Wq = lp["in_proj_w"][0:D_MODEL].T * scale
        bq = lp["in_proj_b"][0:D_MODEL] * scale
        Wk = lp["in_proj_w"][D_MODEL:2 * D_MODEL].T
        bk = lp["in_proj_b"][D_MODEL:2 * D_MODEL]
        Wv = lp["in_proj_w"][2 * D_MODEL:].T
        bv = lp["in_proj_b"][2 * D_MODEL:]
        Wo = lp["out_w"].T
        bo = lp["out_b"]
        wqk.append(jnp.concatenate([Wq, Wk], axis=1))           # (D, 2D)
        bqk.append(jnp.concatenate([bq, bk])[None, :])          # (1, 2D)
        wv.append(Wv)                                           # (D, D)
        wo.append(Wo)                                           # (D, D)
        w1.append(lp["w1"].T)                                   # (D, FF)
        b1.append(lp["b1"][None, :])                            # (1, FF)
        w2.append(lp["w2"].T)                                   # (FF, D)
        vec32.append(jnp.stack([bv, bo, lp["b2"],
                                lp["n1w"], lp["n1b"], lp["n3w"], lp["n3b"]]))
    head_ids = jnp.arange(D_MODEL) // HEAD_DIM
    head_mask = (head_ids[None, :] == jnp.arange(NHEAD)[:, None]).astype(jnp.float32)
    return {
        "wqk": jnp.stack(wqk), "bqk": jnp.stack(bqk),
        "wv": jnp.stack(wv), "wo": jnp.stack(wo),
        "w1": jnp.stack(w1), "b1": jnp.stack(b1), "w2": jnp.stack(w2),
        "vec32": jnp.stack(vec32),                               # (L, 7, D)
        "head_mask": head_mask[:, None, :],                      # (NHEAD, 1, D)
        "fn": jnp.stack([raw["norm_w"], raw["norm_b"]]),         # (2, D)
    }


# ----------------------------- pure-JAX reference -----------------------------
def _ref_ln(z, w, b):
    mu = z.mean(-1, keepdims=True)
    var = ((z - mu) ** 2).mean(-1, keepdims=True)
    return (z - mu) / jnp.sqrt(var + LN_EPS) * w + b


def _ref_layer(x, pos, mask, lp):
    bs, S, D = x.shape
    wq = lp["in_proj_w"][:D_MODEL]
    wk = lp["in_proj_w"][D_MODEL:2 * D_MODEL]
    wv = lp["in_proj_w"][2 * D_MODEL:]
    bq = lp["in_proj_b"][:D_MODEL]
    bk = lp["in_proj_b"][D_MODEL:2 * D_MODEL]
    bv = lp["in_proj_b"][2 * D_MODEL:]
    qk = x + pos[None]
    q = qk @ wq.T + bq
    k = qk @ wk.T + bk
    v = x @ wv.T + bv
    split = lambda t: t.reshape(bs, S, NHEAD, HEAD_DIM).transpose(0, 2, 1, 3)
    qh, kh, vh = split(q), split(k), split(v)
    s = jnp.einsum("bhqd,bhkd->bhqk", qh, kh) / (HEAD_DIM ** 0.5) + mask
    p = jax.nn.softmax(s, axis=-1)
    o = jnp.einsum("bhqk,bhkd->bhqd", p, vh).transpose(0, 2, 1, 3).reshape(bs, S, D)
    attn = o @ lp["out_w"].T + lp["out_b"]
    y = _ref_ln(x + attn, lp["n1w"], lp["n1b"])
    ff = jax.nn.relu(y @ lp["w1"].T + lp["b1"]) @ lp["w2"].T + lp["b2"]
    return _ref_ln(y + ff, lp["n3w"], lp["n3b"])


# ----------------------------- main -------------------------------------------
if __name__ == "__main__":
    key = jax.random.PRNGKey(0)
    k_src, k_pos, k_par = jax.random.split(key, 3)
    src = jax.random.normal(k_src, (BATCH, SEQ, D_MODEL), jnp.float32)
    pos_embed = jax.random.normal(k_pos, (SEQ, 1, D_MODEL), jnp.float32)
    # additive causal mask, as the caller of CausalTransformer would pass
    mask = jnp.where(jnp.triu(jnp.ones((SEQ, SEQ), dtype=bool), k=1),
                     -1e9, 0.0).astype(jnp.float32)

    raw = init_torch_params(k_par)
    packed = pack_params(raw)

    out = causal_transformer_forward(src, mask, pos_embed, packed)
    out = jax.block_until_ready(out)

    # sanity check against a pure-JAX reference of the original (unfused) math
    ref = src
    for lp in raw["layers"]:
        ref = _ref_layer(ref, pos_embed[:, 0, :], mask, lp)
    ref = _ref_ln(ref, raw["norm_w"], raw["norm_b"])

    err = float(jnp.max(jnp.abs(out - ref)))
    # only deviation sources: f32 reassociation from the fused QK projection / masked
    # head-sum and the EUP approximate reciprocal in the softmax denominator.
    assert err < 5e-3, f"mismatch vs reference: {err}"
    print("KERNEL_OK")
</pallas_src>

<mosaic_0001>
module attributes {stable_mosaic.version = 11 : i64} {
  func.func @fused_transformer_kernel(%arg0: i32, %arg1: memref<16x32xf32, #tpu.memory_space<vmem>>, %arg2: memref<16x32xf32, #tpu.memory_space<vmem>>, %arg3: memref<16x16xf32, #tpu.memory_space<vmem>>, %arg4: memref<4x1x32xf32, #tpu.memory_space<vmem>>, %arg5: memref<2x32x64xf32, #tpu.memory_space<vmem>>, %arg6: memref<2x1x64xf32, #tpu.memory_space<vmem>>, %arg7: memref<2x32x32xf32, #tpu.memory_space<vmem>>, %arg8: memref<2x32x32xf32, #tpu.memory_space<vmem>>, %arg9: memref<2x32x64xf32, #tpu.memory_space<vmem>>, %arg10: memref<2x1x64xf32, #tpu.memory_space<vmem>>, %arg11: memref<2x64x32xf32, #tpu.memory_space<vmem>>, %arg12: memref<2x7x32xf32, #tpu.memory_space<vmem>>, %arg13: memref<2x32xf32, #tpu.memory_space<vmem>>, %arg14: memref<16x32xf32, #tpu.memory_space<vmem>>) attributes {dimension_semantics = [#tpu.dimension_semantics<arbitrary>], iteration_bounds = array<i64: 1>, scalar_prefetch = 0 : i64, scratch_operands = 0 : i64, tpu.core_type = #tpu.core_type<tc>, window_params = [{pipeline_mode = #tpu.pipeline_mode<synchronous>, transform_indices = @transform_0, window_bounds = array<i64: 16, 32>}, {pipeline_mode = #tpu.pipeline_mode<synchronous>, transform_indices = @transform_1, window_bounds = array<i64: 16, 32>}, {pipeline_mode = #tpu.pipeline_mode<synchronous>, transform_indices = @transform_2, window_bounds = array<i64: 16, 16>}, {pipeline_mode = #tpu.pipeline_mode<synchronous>, transform_indices = @transform_3, window_bounds = array<i64: 4, 1, 32>}, {pipeline_mode = #tpu.pipeline_mode<synchronous>, transform_indices = @transform_4, window_bounds = array<i64: 2, 32, 64>}, {pipeline_mode = #tpu.pipeline_mode<synchronous>, transform_indices = @transform_5, window_bounds = array<i64: 2, 1, 64>}, {pipeline_mode = #tpu.pipeline_mode<synchronous>, transform_indices = @transform_6, window_bounds = array<i64: 2, 32, 32>}, {pipeline_mode = #tpu.pipeline_mode<synchronous>, transform_indices = @transform_7, window_bounds = array<i64: 2, 32, 32>}, {pipeline_mode = #tpu.pipeline_mode<synchronous>, transform_indices = @transform_8, window_bounds = array<i64: 2, 32, 64>}, {pipeline_mode = #tpu.pipeline_mode<synchronous>, transform_indices = @transform_9, window_bounds = array<i64: 2, 1, 64>}, {pipeline_mode = #tpu.pipeline_mode<synchronous>, transform_indices = @transform_10, window_bounds = array<i64: 2, 64, 32>}, {pipeline_mode = #tpu.pipeline_mode<synchronous>, transform_indices = @transform_11, window_bounds = array<i64: 2, 7, 32>}, {pipeline_mode = #tpu.pipeline_mode<synchronous>, transform_indices = @transform_12, window_bounds = array<i64: 2, 32>}, {pipeline_mode = #tpu.pipeline_mode<synchronous>, transform_indices = @transform_13, window_bounds = array<i64: 16, 32>}]} {
    %c0 = arith.constant 0 : index
    %c0_0 = arith.constant 0 : index
    %0 = vector.load %arg1[%c0, %c0_0] : memref<16x32xf32, #tpu.memory_space<vmem>>, vector<16x32xf32>
    %c0_1 = arith.constant 0 : index
    %c0_2 = arith.constant 0 : index
    %1 = vector.load %arg2[%c0_1, %c0_2] : memref<16x32xf32, #tpu.memory_space<vmem>>, vector<16x32xf32>
    %c0_3 = arith.constant 0 : index
    %c0_4 = arith.constant 0 : index
    %2 = vector.load %arg3[%c0_3, %c0_4] : memref<16x16xf32, #tpu.memory_space<vmem>>, vector<16x16xf32>
    %c0_5 = arith.constant 0 : index
    %c0_6 = arith.constant 0 : index
    %c0_7 = arith.constant 0 : index
    %3 = vector.load %arg12[%c0_5, %c0_6, %c0_7] : memref<2x7x32xf32, #tpu.memory_space<vmem>>, vector<1x1x32xf32>
    %4 = vector.shape_cast %3 : vector<1x1x32xf32> to vector<1x32xf32>
    %c0_8 = arith.constant 0 : index
    %c1 = arith.constant 1 : index
    %c0_9 = arith.constant 0 : index
    %5 = vector.load %arg12[%c0_8, %c1, %c0_9] : memref<2x7x32xf32, #tpu.memory_space<vmem>>, vector<1x1x32xf32>
    %6 = vector.shape_cast %5 : vector<1x1x32xf32> to vector<1x32xf32>
    %c0_10 = arith.constant 0 : index
    %c2 = arith.constant 2 : index
    %c0_11 = arith.constant 0 : index
    %7 = vector.load %arg12[%c0_10, %c2, %c0_11] : memref<2x7x32xf32, #tpu.memory_space<vmem>>, vector<1x1x32xf32>
    %8 = vector.shape_cast %7 : vector<1x1x32xf32> to vector<1x32xf32>
    %c0_12 = arith.constant 0 : index
    %c3 = arith.constant 3 : index
    %c0_13 = arith.constant 0 : index
    %9 = vector.load %arg12[%c0_12, %c3, %c0_13] : memref<2x7x32xf32, #tpu.memory_space<vmem>>, vector<1x1x32xf32>
    %10 = vector.shape_cast %9 : vector<1x1x32xf32> to vector<1x32xf32>
    %c0_14 = arith.constant 0 : index
    %c4 = arith.constant 4 : index
    %c0_15 = arith.constant 0 : index
    %11 = vector.load %arg12[%c0_14, %c4, %c0_15] : memref<2x7x32xf32, #tpu.memory_space<vmem>>, vector<1x1x32xf32>
    %12 = vector.shape_cast %11 : vector<1x1x32xf32> to vector<1x32xf32>
    %c0_16 = arith.constant 0 : index
    %c5 = arith.constant 5 : index
    %c0_17 = arith.constant 0 : index
    %13 = vector.load %arg12[%c0_16, %c5, %c0_17] : memref<2x7x32xf32, #tpu.memory_space<vmem>>, vector<1x1x32xf32>
    %14 = vector.shape_cast %13 : vector<1x1x32xf32> to vector<1x32xf32>
    %c0_18 = arith.constant 0 : index
    %c6 = arith.constant 6 : index
    %c0_19 = arith.constant 0 : index
    %15 = vector.load %arg12[%c0_18, %c6, %c0_19] : memref<2x7x32xf32, #tpu.memory_space<vmem>>, vector<1x1x32xf32>
    %16 = vector.shape_cast %15 : vector<1x1x32xf32> to vector<1x32xf32>
    %17 = arith.addf %0, %1 : vector<16x32xf32>
    %c0_20 = arith.constant 0 : index
    %c0_21 = arith.constant 0 : index
    %c0_22 = arith.constant 0 : index
    %18 = vector.load %arg5[%c0_20, %c0_21, %c0_22] : memref<2x32x64xf32, #tpu.memory_space<vmem>>, vector<1x32x64xf32>
    %19 = vector.shape_cast %18 : vector<1x32x64xf32> to vector<32x64xf32>
    %cst = arith.constant dense<0.000000e+00> : vector<16x64xf32>
    %20 = tpu.matmul %17, %19, %cst {dimension_numbers = #tpu.dot_dimension_numbers<[1], [0], [0], [1], [0, 0, 1, 1], [], []>} : vector<16x32xf32>, vector<32x64xf32>, vector<16x64xf32> -> vector<16x64xf32>
    %c0_23 = arith.constant 0 : index
    %c0_24 = arith.constant 0 : index
    %c0_25 = arith.constant 0 : index
    %21 = vector.load %arg6[%c0_23, %c0_24, %c0_25] : memref<2x1x64xf32, #tpu.memory_space<vmem>>, vector<1x1x64xf32>
    %22 = vector.shape_cast %21 : vector<1x1x64xf32> to vector<1x64xf32>
    %23 = vector.broadcast %22 : vector<1x64xf32> to vector<16x64xf32>
    %24 = arith.addf %20, %23 : vector<16x64xf32>
    %25 = vector.extract_strided_slice %24 {offsets = [0, 0], sizes = [16, 32], strides = [1, 1]} : vector<16x64xf32> to vector<16x32xf32>
    %26 = vector.extract_strided_slice %24 {offsets = [0, 32], sizes = [16, 32], strides = [1, 1]} : vector<16x64xf32> to vector<16x32xf32>
    %c0_26 = arith.constant 0 : index
    %c0_27 = arith.constant 0 : index
    %c0_28 = arith.constant 0 : index
    %27 = vector.load %arg7[%c0_26, %c0_27, %c0_28] : memref<2x32x32xf32, #tpu.memory_space<vmem>>, vector<1x32x32xf32>
    %28 = vector.shape_cast %27 : vector<1x32x32xf32> to vector<32x32xf32>
    %cst_29 = arith.constant dense<0.000000e+00> : vector<16x32xf32>
    %29 = tpu.matmul %0, %28, %cst_29 {dimension_numbers = #tpu.dot_dimension_numbers<[1], [0], [0], [1], [0, 0, 1, 1], [], []>} : vector<16x32xf32>, vector<32x32xf32>, vector<16x32xf32> -> vector<16x32xf32>
    %30 = vector.broadcast %4 : vector<1x32xf32> to vector<16x32xf32>
    %31 = arith.addf %29, %30 : vector<16x32xf32>
    %cst_30 = arith.constant 0.000000e+00 : f32
    %32 = vector.broadcast %cst_30 : f32 to vector<16x32xf32>
    %c0_31 = arith.constant 0 : index
    %c0_32 = arith.constant 0 : index
    %c0_33 = arith.constant 0 : index
    %33 = vector.load %arg4[%c0_31, %c0_32, %c0_33] : memref<4x1x32xf32, #tpu.memory_space<vmem>>, vector<1x1x32xf32>
    %34 = vector.shape_cast %33 : vector<1x1x32xf32> to vector<1x32xf32>
    %35 = vector.broadcast %34 : vector<1x32xf32> to vector<16x32xf32>
    %36 = arith.mulf %26, %35 : vector<16x32xf32>
    %cst_34 = arith.constant dense<0.000000e+00> : vector<16x16xf32>
    %37 = tpu.matmul %25, %36, %cst_34 {dimension_numbers = #tpu.dot_dimension_numbers<[1], [1], [0], [0], [0, 0, 1, 0], [], []>} : vector<16x32xf32>, vector<16x32xf32>, vector<16x16xf32> -> vector<16x16xf32>
    %38 = arith.addf %37, %2 : vector<16x16xf32>
    %cst_35 = arith.constant dense<0xFF800000> : vector<16xf32>
    %39 = vector.multi_reduction <maximumf>, %38, %cst_35 [1] : vector<16x16xf32> to vector<16xf32>
    %40 = vector.shape_cast %39 : vector<16xf32> to vector<16x1xf32>
    %41 = vector.broadcast %40 : vector<16x1xf32> to vector<16x16xf32>
    %42 = arith.subf %38, %41 : vector<16x16xf32>
    %43 = math.exp %42 : vector<16x16xf32>
    %cst_36 = arith.constant dense<0.000000e+00> : vector<16xf32>
    %44 = vector.multi_reduction <add>, %43, %cst_36 [1] : vector<16x16xf32> to vector<16xf32>
    %45 = vector.shape_cast %44 : vector<16xf32> to vector<16x1xf32>
    %46 = tpu.reciprocal %45 {approx = true} : vector<16x1xf32> -> vector<16x1xf32>
    %47 = vector.broadcast %46 : vector<16x1xf32> to vector<16x16xf32>
    %48 = arith.mulf %43, %47 : vector<16x16xf32>
    %49 = vector.broadcast %34 : vector<1x32xf32> to vector<16x32xf32>
    %50 = arith.mulf %31, %49 : vector<16x32xf32>
    %cst_37 = arith.constant dense<0.000000e+00> : vector<16x32xf32>
    %51 = tpu.matmul %48, %50, %cst_37 {dimension_numbers = #tpu.dot_dimension_numbers<[1], [0], [0], [1], [0, 0, 1, 1], [], []>} : vector<16x16xf32>, vector<16x32xf32>, vector<16x32xf32> -> vector<16x32xf32>
    %52 = arith.addf %32, %51 : vector<16x32xf32>
    %c1_38 = arith.constant 1 : index
    %c0_39 = arith.constant 0 : index
    %c0_40 = arith.constant 0 : index
    %53 = vector.load %arg4[%c1_38, %c0_39, %c0_40] : memref<4x1x32xf32, #tpu.memory_space<vmem>>, vector<1x1x32xf32>
    %54 = vector.shape_cast %53 : vector<1x1x32xf32> to vector<1x32xf32>
    %55 = vector.broadcast %54 : vector<1x32xf32> to vector<16x32xf32>
    %56 = arith.mulf %26, %55 : vector<16x32xf32>
    %cst_41 = arith.constant dense<0.000000e+00> : vector<16x16xf32>
    %57 = tpu.matmul %25, %56, %cst_41 {dimension_numbers = #tpu.dot_dimension_numbers<[1], [1], [0], [0], [0, 0, 1, 0], [], []>} : vector<16x32xf32>, vector<16x32xf32>, vector<16x16xf32> -> vector<16x16xf32>
    %58 = arith.addf %57, %2 : vector<16x16xf32>
    %cst_42 = arith.constant dense<0xFF800000> : vector<16xf32>
    %59 = vector.multi_reduction <maximumf>, %58, %cst_42 [1] : vector<16x16xf32> to vector<16xf32>
    %60 = vector.shape_cast %59 : vector<16xf32> to vector<16x1xf32>
    %61 = vector.broadcast %60 : vector<16x1xf32> to vector<16x16xf32>
    %62 = arith.subf %58, %61 : vector<16x16xf32>
    %63 = math.exp %62 : vector<16x16xf32>
    %cst_43 = arith.constant dense<0.000000e+00> : vector<16xf32>
    %64 = vector.multi_reduction <add>, %63, %cst_43 [1] : vector<16x16xf32> to vector<16xf32>
    %65 = vector.shape_cast %64 : vector<16xf32> to vector<16x1xf32>
    %66 = tpu.reciprocal %65 {approx = true} : vector<16x1xf32> -> vector<16x1xf32>
    %67 = vector.broadcast %66 : vector<16x1xf32> to vector<16x16xf32>
    %68 = arith.mulf %63, %67 : vector<16x16xf32>
    %69 = vector.broadcast %54 : vector<1x32xf32> to vector<16x32xf32>
    %70 = arith.mulf %31, %69 : vector<16x32xf32>
    %cst_44 = arith.constant dense<0.000000e+00> : vector<16x32xf32>
    %71 = tpu.matmul %68, %70, %cst_44 {dimension_numbers = #tpu.dot_dimension_numbers<[1], [0], [0], [1], [0, 0, 1, 1], [], []>} : vector<16x16xf32>, vector<16x32xf32>, vector<16x32xf32> -> vector<16x32xf32>
    %72 = arith.addf %52, %71 : vector<16x32xf32>
    %c2_45 = arith.constant 2 : index
    %c0_46 = arith.constant 0 : index
    %c0_47 = arith.constant 0 : index
    %73 = vector.load %arg4[%c2_45, %c0_46, %c0_47] : memref<4x1x32xf32, #tpu.memory_space<vmem>>, vector<1x1x32xf32>
    %74 = vector.shape_cast %73 : vector<1x1x32xf32> to vector<1x32xf32>
    %75 = vector.broadcast %74 : vector<1x32xf32> to vector<16x32xf32>
    %76 = arith.mulf %26, %75 : vector<16x32xf32>
    %cst_48 = arith.constant dense<0.000000e+00> : vector<16x16xf32>
    %77 = tpu.matmul %25, %76, %cst_48 {dimension_numbers = #tpu.dot_dimension_numbers<[1], [1], [0], [0], [0, 0, 1, 0], [], []>} : vector<16x32xf32>, vector<16x32xf32>, vector<16x16xf32> -> vector<16x16xf32>
    %78 = arith.addf %77, %2 : vector<16x16xf32>
    %cst_49 = arith.constant dense<0xFF800000> : vector<16xf32>
    %79 = vector.multi_reduction <maximumf>, %78, %cst_49 [1] : vector<16x16xf32> to vector<16xf32>
    %80 = vector.shape_cast %79 : vector<16xf32> to vector<16x1xf32>
    %81 = vector.broadcast %80 : vector<16x1xf32> to vector<16x16xf32>
    %82 = arith.subf %78, %81 : vector<16x16xf32>
    %83 = math.exp %82 : vector<16x16xf32>
    %cst_50 = arith.constant dense<0.000000e+00> : vector<16xf32>
    %84 = vector.multi_reduction <add>, %83, %cst_50 [1] : vector<16x16xf32> to vector<16xf32>
    %85 = vector.shape_cast %84 : vector<16xf32> to vector<16x1xf32>
    %86 = tpu.reciprocal %85 {approx = true} : vector<16x1xf32> -> vector<16x1xf32>
    %87 = vector.broadcast %86 : vector<16x1xf32> to vector<16x16xf32>
    %88 = arith.mulf %83, %87 : vector<16x16xf32>
    %89 = vector.broadcast %74 : vector<1x32xf32> to vector<16x32xf32>
    %90 = arith.mulf %31, %89 : vector<16x32xf32>
    %cst_51 = arith.constant dense<0.000000e+00> : vector<16x32xf32>
    %91 = tpu.matmul %88, %90, %cst_51 {dimension_numbers = #tpu.dot_dimension_numbers<[1], [0], [0], [1], [0, 0, 1, 1], [], []>} : vector<16x16xf32>, vector<16x32xf32>, vector<16x32xf32> -> vector<16x32xf32>
    %92 = arith.addf %72, %91 : vector<16x32xf32>
    %c3_52 = arith.constant 3 : index
    %c0_53 = arith.constant 0 : index
    %c0_54 = arith.constant 0 : index
    %93 = vector.load %arg4[%c3_52, %c0_53, %c0_54] : memref<4x1x32xf32, #tpu.memory_space<vmem>>, vector<1x1x32xf32>
    %94 = vector.shape_cast %93 : vector<1x1x32xf32> to vector<1x32xf32>
    %95 = vector.broadcast %94 : vector<1x32xf32> to vector<16x32xf32>
    %96 = arith.mulf %26, %95 : vector<16x32xf32>
    %cst_55 = arith.constant dense<0.000000e+00> : vector<16x16xf32>
    %97 = tpu.matmul %25, %96, %cst_55 {dimension_numbers = #tpu.dot_dimension_numbers<[1], [1], [0], [0], [0, 0, 1, 0], [], []>} : vector<16x32xf32>, vector<16x32xf32>, vector<16x16xf32> -> vector<16x16xf32>
    %98 = arith.addf %97, %2 : vector<16x16xf32>
    %cst_56 = arith.constant dense<0xFF800000> : vector<16xf32>
    %99 = vector.multi_reduction <maximumf>, %98, %cst_56 [1] : vector<16x16xf32> to vector<16xf32>
    %100 = vector.shape_cast %99 : vector<16xf32> to vector<16x1xf32>
    %101 = vector.broadcast %100 : vector<16x1xf32> to vector<16x16xf32>
    %102 = arith.subf %98, %101 : vector<16x16xf32>
    %103 = math.exp %102 : vector<16x16xf32>
    %cst_57 = arith.constant dense<0.000000e+00> : vector<16xf32>
    %104 = vector.multi_reduction <add>, %103, %cst_57 [1] : vector<16x16xf32> to vector<16xf32>
    %105 = vector.shape_cast %104 : vector<16xf32> to vector<16x1xf32>
    %106 = tpu.reciprocal %105 {approx = true} : vector<16x1xf32> -> vector<16x1xf32>
    %107 = vector.broadcast %106 : vector<16x1xf32> to vector<16x16xf32>
    %108 = arith.mulf %103, %107 : vector<16x16xf32>
    %109 = vector.broadcast %94 : vector<1x32xf32> to vector<16x32xf32>
    %110 = arith.mulf %31, %109 : vector<16x32xf32>
    %cst_58 = arith.constant dense<0.000000e+00> : vector<16x32xf32>
    %111 = tpu.matmul %108, %110, %cst_58 {dimension_numbers = #tpu.dot_dimension_numbers<[1], [0], [0], [1], [0, 0, 1, 1], [], []>} : vector<16x16xf32>, vector<16x32xf32>, vector<16x32xf32> -> vector<16x32xf32>
    %112 = arith.addf %92, %111 : vector<16x32xf32>
    %c0_59 = arith.constant 0 : index
    %c0_60 = arith.constant 0 : index
    %c0_61 = arith.constant 0 : index
    %113 = vector.load %arg8[%c0_59, %c0_60, %c0_61] : memref<2x32x32xf32, #tpu.memory_space<vmem>>, vector<1x32x32xf32>
    %114 = vector.shape_cast %113 : vector<1x32x32xf32> to vector<32x32xf32>
    %cst_62 = arith.constant dense<0.000000e+00> : vector<16x32xf32>
    %115 = tpu.matmul %112, %114, %cst_62 {dimension_numbers = #tpu.dot_dimension_numbers<[1], [0], [0], [1], [0, 0, 1, 1], [], []>} : vector<16x32xf32>, vector<32x32xf32>, vector<16x32xf32> -> vector<16x32xf32>
    %116 = vector.broadcast %6 : vector<1x32xf32> to vector<16x32xf32>
    %117 = arith.addf %115, %116 : vector<16x32xf32>
    %118 = arith.addf %0, %117 : vector<16x32xf32>
    %cst_63 = arith.constant dense<0.000000e+00> : vector<16xf32>
    %119 = vector.multi_reduction <add>, %118, %cst_63 [1] : vector<16x32xf32> to vector<16xf32>
    %120 = vector.shape_cast %119 : vector<16xf32> to vector<16x1xf32>
    %cst_64 = arith.constant 3.200000e+01 : f32
    %121 = vector.broadcast %cst_64 : f32 to vector<16x1xf32>
    %122 = arith.divf %120, %121 : vector<16x1xf32>
    %123 = vector.broadcast %122 : vector<16x1xf32> to vector<16x32xf32>
    %124 = arith.subf %118, %123 : vector<16x32xf32>
    %125 = vector.broadcast %122 : vector<16x1xf32> to vector<16x32xf32>
    %126 = arith.subf %118, %125 : vector<16x32xf32>
    %127 = arith.mulf %124, %126 : vector<16x32xf32>
    %cst_65 = arith.constant dense<0.000000e+00> : vector<16xf32>
    %128 = vector.multi_reduction <add>, %127, %cst_65 [1] : vector<16x32xf32> to vector<16xf32>
    %129 = vector.shape_cast %128 : vector<16xf32> to vector<16x1xf32>
    %cst_66 = arith.constant 3.200000e+01 : f32
    %130 = vector.broadcast %cst_66 : f32 to vector<16x1xf32>
    %131 = arith.divf %129, %130 : vector<16x1xf32>
    %132 = vector.broadcast %122 : vector<16x1xf32> to vector<16x32xf32>
    %133 = arith.subf %118, %132 : vector<16x32xf32>
    %cst_67 = arith.constant 9.99999974E-6 : f32
    %134 = vector.broadcast %cst_67 : f32 to vector<16x1xf32>
    %135 = arith.addf %131, %134 : vector<16x1xf32>
    %136 = math.rsqrt %135 : vector<16x1xf32>
    %137 = vector.broadcast %136 : vector<16x1xf32> to vector<16x32xf32>
    %138 = arith.mulf %133, %137 : vector<16x32xf32>
    %139 = vector.broadcast %10 : vector<1x32xf32> to vector<16x32xf32>
    %140 = arith.mulf %138, %139 : vector<16x32xf32>
    %141 = vector.broadcast %12 : vector<1x32xf32> to vector<16x32xf32>
    %142 = arith.addf %140, %141 : vector<16x32xf32>
    %c0_68 = arith.constant 0 : index
    %c0_69 = arith.constant 0 : index
    %c0_70 = arith.constant 0 : index
    %143 = vector.load %arg9[%c0_68, %c0_69, %c0_70] : memref<2x32x64xf32, #tpu.memory_space<vmem>>, vector<1x32x64xf32>
    %144 = vector.shape_cast %143 : vector<1x32x64xf32> to vector<32x64xf32>
    %cst_71 = arith.constant dense<0.000000e+00> : vector<16x64xf32>
    %145 = tpu.matmul %142, %144, %cst_71 {dimension_numbers = #tpu.dot_dimension_numbers<[1], [0], [0], [1], [0, 0, 1, 1], [], []>} : vector<16x32xf32>, vector<32x64xf32>, vector<16x64xf32> -> vector<16x64xf32>
    %c0_72 = arith.constant 0 : index
    %c0_73 = arith.constant 0 : index
    %c0_74 = arith.constant 0 : index
    %146 = vector.load %arg10[%c0_72, %c0_73, %c0_74] : memref<2x1x64xf32, #tpu.memory_space<vmem>>, vector<1x1x64xf32>
    %147 = vector.shape_cast %146 : vector<1x1x64xf32> to vector<1x64xf32>
    %148 = vector.broadcast %147 : vector<1x64xf32> to vector<16x64xf32>
    %149 = arith.addf %145, %148 : vector<16x64xf32>
    %cst_75 = arith.constant 0.000000e+00 : f32
    %150 = vector.broadcast %cst_75 : f32 to vector<16x64xf32>
    %151 = arith.maximumf %149, %150 : vector<16x64xf32>
    %c0_76 = arith.constant 0 : index
    %c0_77 = arith.constant 0 : index
    %c0_78 = arith.constant 0 : index
    %152 = vector.load %arg11[%c0_76, %c0_77, %c0_78] : memref<2x64x32xf32, #tpu.memory_space<vmem>>, vector<1x64x32xf32>
    %153 = vector.shape_cast %152 : vector<1x64x32xf32> to vector<64x32xf32>
    %cst_79 = arith.constant dense<0.000000e+00> : vector<16x32xf32>
    %154 = tpu.matmul %151, %153, %cst_79 {dimension_numbers = #tpu.dot_dimension_numbers<[1], [0], [0], [1], [0, 0, 1, 1], [], []>} : vector<16x64xf32>, vector<64x32xf32>, vector<16x32xf32> -> vector<16x32xf32>
    %155 = vector.broadcast %8 : vector<1x32xf32> to vector<16x32xf32>
    %156 = arith.addf %154, %155 : vector<16x32xf32>
    %157 = arith.addf %142, %156 : vector<16x32xf32>
    %cst_80 = arith.constant dense<0.000000e+00> : vector<16xf32>
    %158 = vector.multi_reduction <add>, %157, %cst_80 [1] : vector<16x32xf32> to vector<16xf32>
    %159 = vector.shape_cast %158 : vector<16xf32> to vector<16x1xf32>
    %cst_81 = arith.constant 3.200000e+01 : f32
    %160 = vector.broadcast %cst_81 : f32 to vector<16x1xf32>
    %161 = arith.divf %159, %160 : vector<16x1xf32>
    %162 = vector.broadcast %161 : vector<16x1xf32> to vector<16x32xf32>
    %163 = arith.subf %157, %162 : vector<16x32xf32>
    %164 = vector.broadcast %161 : vector<16x1xf32> to vector<16x32xf32>
    %165 = arith.subf %157, %164 : vector<16x32xf32>
    %166 = arith.mulf %163, %165 : vector<16x32xf32>
    %cst_82 = arith.constant dense<0.000000e+00> : vector<16xf32>
    %167 = vector.multi_reduction <add>, %166, %cst_82 [1] : vector<16x32xf32> to vector<16xf32>
    %168 = vector.shape_cast %167 : vector<16xf32> to vector<16x1xf32>
    %cst_83 = arith.constant 3.200000e+01 : f32
    %169 = vector.broadcast %cst_83 : f32 to vector<16x1xf32>
    %170 = arith.divf %168, %169 : vector<16x1xf32>
    %171 = vector.broadcast %161 : vector<16x1xf32> to vector<16x32xf32>
    %172 = arith.subf %157, %171 : vector<16x32xf32>
    %cst_84 = arith.constant 9.99999974E-6 : f32
    %173 = vector.broadcast %cst_84 : f32 to vector<16x1xf32>
    %174 = arith.addf %170, %173 : vector<16x1xf32>
    %175 = math.rsqrt %174 : vector<16x1xf32>
    %176 = vector.broadcast %175 : vector<16x1xf32> to vector<16x32xf32>
    %177 = arith.mulf %172, %176 : vector<16x32xf32>
    %178 = vector.broadcast %14 : vector<1x32xf32> to vector<16x32xf32>
    %179 = arith.mulf %177, %178 : vector<16x32xf32>
    %180 = vector.broadcast %16 : vector<1x32xf32> to vector<16x32xf32>
    %181 = arith.addf %179, %180 : vector<16x32xf32>
    %c1_85 = arith.constant 1 : index
    %c0_86 = arith.constant 0 : index
    %c0_87 = arith.constant 0 : index
    %182 = vector.load %arg12[%c1_85, %c0_86, %c0_87] : memref<2x7x32xf32, #tpu.memory_space<vmem>>, vector<1x1x32xf32>
    %183 = vector.shape_cast %182 : vector<1x1x32xf32> to vector<1x32xf32>
    %c1_88 = arith.constant 1 : index
    %c1_89 = arith.constant 1 : index
    %c0_90 = arith.constant 0 : index
    %184 = vector.load %arg12[%c1_88, %c1_89, %c0_90] : memref<2x7x32xf32, #tpu.memory_space<vmem>>, vector<1x1x32xf32>
    %185 = vector.shape_cast %184 : vector<1x1x32xf32> to vector<1x32xf32>
    %c1_91 = arith.constant 1 : index
    %c2_92 = arith.constant 2 : index
    %c0_93 = arith.constant 0 : index
    %186 = vector.load %arg12[%c1_91, %c2_92, %c0_93] : memref<2x7x32xf32, #tpu.memory_space<vmem>>, vector<1x1x32xf32>
    %187 = vector.shape_cast %186 : vector<1x1x32xf32> to vector<1x32xf32>
    %c1_94 = arith.constant 1 : index
    %c3_95 = arith.constant 3 : index
    %c0_96 = arith.constant 0 : index
    %188 = vector.load %arg12[%c1_94, %c3_95, %c0_96] : memref<2x7x32xf32, #tpu.memory_space<vmem>>, vector<1x1x32xf32>
    %189 = vector.shape_cast %188 : vector<1x1x32xf32> to vector<1x32xf32>
    %c1_97 = arith.constant 1 : index
    %c4_98 = arith.constant 4 : index
    %c0_99 = arith.constant 0 : index
    %190 = vector.load %arg12[%c1_97, %c4_98, %c0_99] : memref<2x7x32xf32, #tpu.memory_space<vmem>>, vector<1x1x32xf32>
    %191 = vector.shape_cast %190 : vector<1x1x32xf32> to vector<1x32xf32>
    %c1_100 = arith.constant 1 : index
    %c5_101 = arith.constant 5 : index
    %c0_102 = arith.constant 0 : index
    %192 = vector.load %arg12[%c1_100, %c5_101, %c0_102] : memref<2x7x32xf32, #tpu.memory_space<vmem>>, vector<1x1x32xf32>
    %193 = vector.shape_cast %192 : vector<1x1x32xf32> to vector<1x32xf32>
    %c1_103 = arith.constant 1 : index
    %c6_104 = arith.constant 6 : index
    %c0_105 = arith.constant 0 : index
    %194 = vector.load %arg12[%c1_103, %c6_104, %c0_105] : memref<2x7x32xf32, #tpu.memory_space<vmem>>, vector<1x1x32xf32>
    %195 = vector.shape_cast %194 : vector<1x1x32xf32> to vector<1x32xf32>
    %196 = arith.addf %181, %1 : vector<16x32xf32>
    %c1_106 = arith.constant 1 : index
    %c0_107 = arith.constant 0 : index
    %c0_108 = arith.constant 0 : index
    %197 = vector.load %arg5[%c1_106, %c0_107, %c0_108] : memref<2x32x64xf32, #tpu.memory_space<vmem>>, vector<1x32x64xf32>
    %198 = vector.shape_cast %197 : vector<1x32x64xf32> to vector<32x64xf32>
    %cst_109 = arith.constant dense<0.000000e+00> : vector<16x64xf32>
    %199 = tpu.matmul %196, %198, %cst_109 {dimension_numbers = #tpu.dot_dimension_numbers<[1], [0], [0], [1], [0, 0, 1, 1], [], []>} : vector<16x32xf32>, vector<32x64xf32>, vector<16x64xf32> -> vector<16x64xf32>
    %c1_110 = arith.constant 1 : index
    %c0_111 = arith.constant 0 : index
    %c0_112 = arith.constant 0 : index
    %200 = vector.load %arg6[%c1_110, %c0_111, %c0_112] : memref<2x1x64xf32, #tpu.memory_space<vmem>>, vector<1x1x64xf32>
    %201 = vector.shape_cast %200 : vector<1x1x64xf32> to vector<1x64xf32>
    %202 = vector.broadcast %201 : vector<1x64xf32> to vector<16x64xf32>
    %203 = arith.addf %199, %202 : vector<16x64xf32>
    %204 = vector.extract_strided_slice %203 {offsets = [0, 0], sizes = [16, 32], strides = [1, 1]} : vector<16x64xf32> to vector<16x32xf32>
    %205 = vector.extract_strided_slice %203 {offsets = [0, 32], sizes = [16, 32], strides = [1, 1]} : vector<16x64xf32> to vector<16x32xf32>
    %c1_113 = arith.constant 1 : index
    %c0_114 = arith.constant 0 : index
    %c0_115 = arith.constant 0 : index
    %206 = vector.load %arg7[%c1_113, %c0_114, %c0_115] : memref<2x32x32xf32, #tpu.memory_space<vmem>>, vector<1x32x32xf32>
    %207 = vector.shape_cast %206 : vector<1x32x32xf32> to vector<32x32xf32>
    %cst_116 = arith.constant dense<0.000000e+00> : vector<16x32xf32>
    %208 = tpu.matmul %181, %207, %cst_116 {dimension_numbers = #tpu.dot_dimension_numbers<[1], [0], [0], [1], [0, 0, 1, 1], [], []>} : vector<16x32xf32>, vector<32x32xf32>, vector<16x32xf32> -> vector<16x32xf32>
    %209 = vector.broadcast %183 : vector<1x32xf32> to vector<16x32xf32>
    %210 = arith.addf %208, %209 : vector<16x32xf32>
    %cst_117 = arith.constant 0.000000e+00 : f32
    %211 = vector.broadcast %cst_117 : f32 to vector<16x32xf32>
    %c0_118 = arith.constant 0 : index
    %c0_119 = arith.constant 0 : index
    %c0_120 = arith.constant 0 : index
    %212 = vector.load %arg4[%c0_118, %c0_119, %c0_120] : memref<4x1x32xf32, #tpu.memory_space<vmem>>, vector<1x1x32xf32>
    %213 = vector.shape_cast %212 : vector<1x1x32xf32> to vector<1x32xf32>
    %214 = vector.broadcast %213 : vector<1x32xf32> to vector<16x32xf32>
    %215 = arith.mulf %205, %214 : vector<16x32xf32>
    %cst_121 = arith.constant dense<0.000000e+00> : vector<16x16xf32>
    %216 = tpu.matmul %204, %215, %cst_121 {dimension_numbers = #tpu.dot_dimension_numbers<[1], [1], [0], [0], [0, 0, 1, 0], [], []>} : vector<16x32xf32>, vector<16x32xf32>, vector<16x16xf32> -> vector<16x16xf32>
    %217 = arith.addf %216, %2 : vector<16x16xf32>
    %cst_122 = arith.constant dense<0xFF800000> : vector<16xf32>
    %218 = vector.multi_reduction <maximumf>, %217, %cst_122 [1] : vector<16x16xf32> to vector<16xf32>
    %219 = vector.shape_cast %218 : vector<16xf32> to vector<16x1xf32>
    %220 = vector.broadcast %219 : vector<16x1xf32> to vector<16x16xf32>
    %221 = arith.subf %217, %220 : vector<16x16xf32>
    %222 = math.exp %221 : vector<16x16xf32>
    %cst_123 = arith.constant dense<0.000000e+00> : vector<16xf32>
    %223 = vector.multi_reduction <add>, %222, %cst_123 [1] : vector<16x16xf32> to vector<16xf32>
    %224 = vector.shape_cast %223 : vector<16xf32> to vector<16x1xf32>
    %225 = tpu.reciprocal %224 {approx = true} : vector<16x1xf32> -> vector<16x1xf32>
    %226 = vector.broadcast %225 : vector<16x1xf32> to vector<16x16xf32>
    %227 = arith.mulf %222, %226 : vector<16x16xf32>
    %228 = vector.broadcast %213 : vector<1x32xf32> to vector<16x32xf32>
    %229 = arith.mulf %210, %228 : vector<16x32xf32>
    %cst_124 = arith.constant dense<0.000000e+00> : vector<16x32xf32>
    %230 = tpu.matmul %227, %229, %cst_124 {dimension_numbers = #tpu.dot_dimension_numbers<[1], [0], [0], [1], [0, 0, 1, 1], [], []>} : vector<16x16xf32>, vector<16x32xf32>, vector<16x32xf32> -> vector<16x32xf32>
    %231 = arith.addf %211, %230 : vector<16x32xf32>
    %c1_125 = arith.constant 1 : index
    %c0_126 = arith.constant 0 : index
    %c0_127 = arith.constant 0 : index
    %232 = vector.load %arg4[%c1_125, %c0_126, %c0_127] : memref<4x1x32xf32, #tpu.memory_space<vmem>>, vector<1x1x32xf32>
    %233 = vector.shape_cast %232 : vector<1x1x32xf32> to vector<1x32xf32>
    %234 = vector.broadcast %233 : vector<1x32xf32> to vector<16x32xf32>
    %235 = arith.mulf %205, %234 : vector<16x32xf32>
    %cst_128 = arith.constant dense<0.000000e+00> : vector<16x16xf32>
    %236 = tpu.matmul %204, %235, %cst_128 {dimension_numbers = #tpu.dot_dimension_numbers<[1], [1], [0], [0], [0, 0, 1, 0], [], []>} : vector<16x32xf32>, vector<16x32xf32>, vector<16x16xf32> -> vector<16x16xf32>
    %237 = arith.addf %236, %2 : vector<16x16xf32>
    %cst_129 = arith.constant dense<0xFF800000> : vector<16xf32>
    %238 = vector.multi_reduction <maximumf>, %237, %cst_129 [1] : vector<16x16xf32> to vector<16xf32>
    %239 = vector.shape_cast %238 : vector<16xf32> to vector<16x1xf32>
    %240 = vector.broadcast %239 : vector<16x1xf32> to vector<16x16xf32>
    %241 = arith.subf %237, %240 : vector<16x16xf32>
    %242 = math.exp %241 : vector<16x16xf32>
    %cst_130 = arith.constant dense<0.000000e+00> : vector<16xf32>
    %243 = vector.multi_reduction <add>, %242, %cst_130 [1] : vector<16x16xf32> to vector<16xf32>
    %244 = vector.shape_cast %243 : vector<16xf32> to vector<16x1xf32>
    %245 = tpu.reciprocal %244 {approx = true} : vector<16x1xf32> -> vector<16x1xf32>
    %246 = vector.broadcast %245 : vector<16x1xf32> to vector<16x16xf32>
    %247 = arith.mulf %242, %246 : vector<16x16xf32>
    %248 = vector.broadcast %233 : vector<1x32xf32> to vector<16x32xf32>
    %249 = arith.mulf %210, %248 : vector<16x32xf32>
    %cst_131 = arith.constant dense<0.000000e+00> : vector<16x32xf32>
    %250 = tpu.matmul %247, %249, %cst_131 {dimension_numbers = #tpu.dot_dimension_numbers<[1], [0], [0], [1], [0, 0, 1, 1], [], []>} : vector<16x16xf32>, vector<16x32xf32>, vector<16x32xf32> -> vector<16x32xf32>
    %251 = arith.addf %231, %250 : vector<16x32xf32>
    %c2_132 = arith.constant 2 : index
    %c0_133 = arith.constant 0 : index
    %c0_134 = arith.constant 0 : index
    %252 = vector.load %arg4[%c2_132, %c0_133, %c0_134] : memref<4x1x32xf32, #tpu.memory_space<vmem>>, vector<1x1x32xf32>
    %253 = vector.shape_cast %252 : vector<1x1x32xf32> to vector<1x32xf32>
    %254 = vector.broadcast %253 : vector<1x32xf32> to vector<16x32xf32>
    %255 = arith.mulf %205, %254 : vector<16x32xf32>
    %cst_135 = arith.constant dense<0.000000e+00> : vector<16x16xf32>
    %256 = tpu.matmul %204, %255, %cst_135 {dimension_numbers = #tpu.dot_dimension_numbers<[1], [1], [0], [0], [0, 0, 1, 0], [], []>} : vector<16x32xf32>, vector<16x32xf32>, vector<16x16xf32> -> vector<16x16xf32>
    %257 = arith.addf %256, %2 : vector<16x16xf32>
    %cst_136 = arith.constant dense<0xFF800000> : vector<16xf32>
    %258 = vector.multi_reduction <maximumf>, %257, %cst_136 [1] : vector<16x16xf32> to vector<16xf32>
    %259 = vector.shape_cast %258 : vector<16xf32> to vector<16x1xf32>
    %260 = vector.broadcast %259 : vector<16x1xf32> to vector<16x16xf32>
    %261 = arith.subf %257, %260 : vector<16x16xf32>
    %262 = math.exp %261 : vector<16x16xf32>
    %cst_137 = arith.constant dense<0.000000e+00> : vector<16xf32>
    %263 = vector.multi_reduction <add>, %262, %cst_137 [1] : vector<16x16xf32> to vector<16xf32>
    %264 = vector.shape_cast %263 : vector<16xf32> to vector<16x1xf32>
    %265 = tpu.reciprocal %264 {approx = true} : vector<16x1xf32> -> vector<16x1xf32>
    %266 = vector.broadcast %265 : vector<16x1xf32> to vector<16x16xf32>
    %267 = arith.mulf %262, %266 : vector<16x16xf32>
    %268 = vector.broadcast %253 : vector<1x32xf32> to vector<16x32xf32>
    %269 = arith.mulf %210, %268 : vector<16x32xf32>
    %cst_138 = arith.constant dense<0.000000e+00> : vector<16x32xf32>
    %270 = tpu.matmul %267, %269, %cst_138 {dimension_numbers = #tpu.dot_dimension_numbers<[1], [0], [0], [1], [0, 0, 1, 1], [], []>} : vector<16x16xf32>, vector<16x32xf32>, vector<16x32xf32> -> vector<16x32xf32>
    %271 = arith.addf %251, %270 : vector<16x32xf32>
    %c3_139 = arith.constant 3 : index
    %c0_140 = arith.constant 0 : index
    %c0_141 = arith.constant 0 : index
    %272 = vector.load %arg4[%c3_139, %c0_140, %c0_141] : memref<4x1x32xf32, #tpu.memory_space<vmem>>, vector<1x1x32xf32>
    %273 = vector.shape_cast %272 : vector<1x1x32xf32> to vector<1x32xf32>
    %274 = vector.broadcast %273 : vector<1x32xf32> to vector<16x32xf32>
    %275 = arith.mulf %205, %274 : vector<16x32xf32>
    %cst_142 = arith.constant dense<0.000000e+00> : vector<16x16xf32>
    %276 = tpu.matmul %204, %275, %cst_142 {dimension_numbers = #tpu.dot_dimension_numbers<[1], [1], [0], [0], [0, 0, 1, 0], [], []>} : vector<16x32xf32>, vector<16x32xf32>, vector<16x16xf32> -> vector<16x16xf32>
    %277 = arith.addf %276, %2 : vector<16x16xf32>
    %cst_143 = arith.constant dense<0xFF800000> : vector<16xf32>
    %278 = vector.multi_reduction <maximumf>, %277, %cst_143 [1] : vector<16x16xf32> to vector<16xf32>
    %279 = vector.shape_cast %278 : vector<16xf32> to vector<16x1xf32>
    %280 = vector.broadcast %279 : vector<16x1xf32> to vector<16x16xf32>
    %281 = arith.subf %277, %280 : vector<16x16xf32>
    %282 = math.exp %281 : vector<16x16xf32>
    %cst_144 = arith.constant dense<0.000000e+00> : vector<16xf32>
    %283 = vector.multi_reduction <add>, %282, %cst_144 [1] : vector<16x16xf32> to vector<16xf32>
    %284 = vector.shape_cast %283 : vector<16xf32> to vector<16x1xf32>
    %285 = tpu.reciprocal %284 {approx = true} : vector<16x1xf32> -> vector<16x1xf32>
    %286 = vector.broadcast %285 : vector<16x1xf32> to vector<16x16xf32>
    %287 = arith.mulf %282, %286 : vector<16x16xf32>
    %288 = vector.broadcast %273 : vector<1x32xf32> to vector<16x32xf32>
    %289 = arith.mulf %210, %288 : vector<16x32xf32>
    %cst_145 = arith.constant dense<0.000000e+00> : vector<16x32xf32>
    %290 = tpu.matmul %287, %289, %cst_145 {dimension_numbers = #tpu.dot_dimension_numbers<[1], [0], [0], [1], [0, 0, 1, 1], [], []>} : vector<16x16xf32>, vector<16x32xf32>, vector<16x32xf32> -> vector<16x32xf32>
    %291 = arith.addf %271, %290 : vector<16x32xf32>
    %c1_146 = arith.constant 1 : index
    %c0_147 = arith.constant 0 : index
    %c0_148 = arith.constant 0 : index
    %292 = vector.load %arg8[%c1_146, %c0_147, %c0_148] : memref<2x32x32xf32, #tpu.memory_space<vmem>>, vector<1x32x32xf32>
    %293 = vector.shape_cast %292 : vector<1x32x32xf32> to vector<32x32xf32>
    %cst_149 = arith.constant dense<0.000000e+00> : vector<16x32xf32>
    %294 = tpu.matmul %291, %293, %cst_149 {dimension_numbers = #tpu.dot_dimension_numbers<[1], [0], [0], [1], [0, 0, 1, 1], [], []>} : vector<16x32xf32>, vector<32x32xf32>, vector<16x32xf32> -> vector<16x32xf32>
    %295 = vector.broadcast %185 : vector<1x32xf32> to vector<16x32xf32>
    %296 = arith.addf %294, %295 : vector<16x32xf32>
    %297 = arith.addf %181, %296 : vector<16x32xf32>
    %cst_150 = arith.constant dense<0.000000e+00> : vector<16xf32>
    %298 = vector.multi_reduction <add>, %297, %cst_150 [1] : vector<16x32xf32> to vector<16xf32>
    %299 = vector.shape_cast %298 : vector<16xf32> to vector<16x1xf32>
    %cst_151 = arith.constant 3.200000e+01 : f32
    %300 = vector.broadcast %cst_151 : f32 to vector<16x1xf32>
    %301 = arith.divf %299, %300 : vector<16x1xf32>
    %302 = vector.broadcast %301 : vector<16x1xf32> to vector<16x32xf32>
    %303 = arith.subf %297, %302 : vector<16x32xf32>
    %304 = vector.broadcast %301 : vector<16x1xf32> to vector<16x32xf32>
    %305 = arith.subf %297, %304 : vector<16x32xf32>
    %306 = arith.mulf %303, %305 : vector<16x32xf32>
    %cst_152 = arith.constant dense<0.000000e+00> : vector<16xf32>
    %307 = vector.multi_reduction <add>, %306, %cst_152 [1] : vector<16x32xf32> to vector<16xf32>
    %308 = vector.shape_cast %307 : vector<16xf32> to vector<16x1xf32>
    %cst_153 = arith.constant 3.200000e+01 : f32
    %309 = vector.broadcast %cst_153 : f32 to vector<16x1xf32>
    %310 = arith.divf %308, %309 : vector<16x1xf32>
    %311 = vector.broadcast %301 : vector<16x1xf32> to vector<16x32xf32>
    %312 = arith.subf %297, %311 : vector<16x32xf32>
    %cst_154 = arith.constant 9.99999974E-6 : f32
    %313 = vector.broadcast %cst_154 : f32 to vector<16x1xf32>
    %314 = arith.addf %310, %313 : vector<16x1xf32>
    %315 = math.rsqrt %314 : vector<16x1xf32>
    %316 = vector.broadcast %315 : vector<16x1xf32> to vector<16x32xf32>
    %317 = arith.mulf %312, %316 : vector<16x32xf32>
    %318 = vector.broadcast %189 : vector<1x32xf32> to vector<16x32xf32>
    %319 = arith.mulf %317, %318 : vector<16x32xf32>
    %320 = vector.broadcast %191 : vector<1x32xf32> to vector<16x32xf32>
    %321 = arith.addf %319, %320 : vector<16x32xf32>
    %c1_155 = arith.constant 1 : index
    %c0_156 = arith.constant 0 : index
    %c0_157 = arith.constant 0 : index
    %322 = vector.load %arg9[%c1_155, %c0_156, %c0_157] : memref<2x32x64xf32, #tpu.memory_space<vmem>>, vector<1x32x64xf32>
    %323 = vector.shape_cast %322 : vector<1x32x64xf32> to vector<32x64xf32>
    %cst_158 = arith.constant dense<0.000000e+00> : vector<16x64xf32>
    %324 = tpu.matmul %321, %323, %cst_158 {dimension_numbers = #tpu.dot_dimension_numbers<[1], [0], [0], [1], [0, 0, 1, 1], [], []>} : vector<16x32xf32>, vector<32x64xf32>, vector<16x64xf32> -> vector<16x64xf32>
    %c1_159 = arith.constant 1 : index
    %c0_160 = arith.constant 0 : index
    %c0_161 = arith.constant 0 : index
    %325 = vector.load %arg10[%c1_159, %c0_160, %c0_161] : memref<2x1x64xf32, #tpu.memory_space<vmem>>, vector<1x1x64xf32>
    %326 = vector.shape_cast %325 : vector<1x1x64xf32> to vector<1x64xf32>
    %327 = vector.broadcast %326 : vector<1x64xf32> to vector<16x64xf32>
    %328 = arith.addf %324, %327 : vector<16x64xf32>
    %cst_162 = arith.constant 0.000000e+00 : f32
    %329 = vector.broadcast %cst_162 : f32 to vector<16x64xf32>
    %330 = arith.maximumf %328, %329 : vector<16x64xf32>
    %c1_163 = arith.constant 1 : index
    %c0_164 = arith.constant 0 : index
    %c0_165 = arith.constant 0 : index
    %331 = vector.load %arg11[%c1_163, %c0_164, %c0_165] : memref<2x64x32xf32, #tpu.memory_space<vmem>>, vector<1x64x32xf32>
    %332 = vector.shape_cast %331 : vector<1x64x32xf32> to vector<64x32xf32>
    %cst_166 = arith.constant dense<0.000000e+00> : vector<16x32xf32>
    %333 = tpu.matmul %330, %332, %cst_166 {dimension_numbers = #tpu.dot_dimension_numbers<[1], [0], [0], [1], [0, 0, 1, 1], [], []>} : vector<16x64xf32>, vector<64x32xf32>, vector<16x32xf32> -> vector<16x32xf32>
    %334 = vector.broadcast %187 : vector<1x32xf32> to vector<16x32xf32>
    %335 = arith.addf %333, %334 : vector<16x32xf32>
    %336 = arith.addf %321, %335 : vector<16x32xf32>
    %cst_167 = arith.constant dense<0.000000e+00> : vector<16xf32>
    %337 = vector.multi_reduction <add>, %336, %cst_167 [1] : vector<16x32xf32> to vector<16xf32>
    %338 = vector.shape_cast %337 : vector<16xf32> to vector<16x1xf32>
    %cst_168 = arith.constant 3.200000e+01 : f32
    %339 = vector.broadcast %cst_168 : f32 to vector<16x1xf32>
    %340 = arith.divf %338, %339 : vector<16x1xf32>
    %341 = vector.broadcast %340 : vector<16x1xf32> to vector<16x32xf32>
    %342 = arith.subf %336, %341 : vector<16x32xf32>
    %343 = vector.broadcast %340 : vector<16x1xf32> to vector<16x32xf32>
    %344 = arith.subf %336, %343 : vector<16x32xf32>
    %345 = arith.mulf %342, %344 : vector<16x32xf32>
    %cst_169 = arith.constant dense<0.000000e+00> : vector<16xf32>
    %346 = vector.multi_reduction <add>, %345, %cst_169 [1] : vector<16x32xf32> to vector<16xf32>
    %347 = vector.shape_cast %346 : vector<16xf32> to vector<16x1xf32>
    %cst_170 = arith.constant 3.200000e+01 : f32
    %348 = vector.broadcast %cst_170 : f32 to vector<16x1xf32>
    %349 = arith.divf %347, %348 : vector<16x1xf32>
    %350 = vector.broadcast %340 : vector<16x1xf32> to vector<16x32xf32>
    %351 = arith.subf %336, %350 : vector<16x32xf32>
    %cst_171 = arith.constant 9.99999974E-6 : f32
    %352 = vector.broadcast %cst_171 : f32 to vector<16x1xf32>
    %353 = arith.addf %349, %352 : vector<16x1xf32>
    %354 = math.rsqrt %353 : vector<16x1xf32>
    %355 = vector.broadcast %354 : vector<16x1xf32> to vector<16x32xf32>
    %356 = arith.mulf %351, %355 : vector<16x32xf32>
    %357 = vector.broadcast %193 : vector<1x32xf32> to vector<16x32xf32>
    %358 = arith.mulf %356, %357 : vector<16x32xf32>
    %359 = vector.broadcast %195 : vector<1x32xf32> to vector<16x32xf32>
    %360 = arith.addf %358, %359 : vector<16x32xf32>
    %c0_172 = arith.constant 0 : index
    %c0_173 = arith.constant 0 : index
    %361 = vector.load %arg13[%c0_172, %c0_173] : memref<2x32xf32, #tpu.memory_space<vmem>>, vector<1x32xf32>
    %c1_174 = arith.constant 1 : index
    %c0_175 = arith.constant 0 : index
    %362 = vector.load %arg13[%c1_174, %c0_175] : memref<2x32xf32, #tpu.memory_space<vmem>>, vector<1x32xf32>
    %cst_176 = arith.constant dense<0.000000e+00> : vector<16xf32>
    %363 = vector.multi_reduction <add>, %360, %cst_176 [1] : vector<16x32xf32> to vector<16xf32>
    %364 = vector.shape_cast %363 : vector<16xf32> to vector<16x1xf32>
    %cst_177 = arith.constant 3.200000e+01 : f32
    %365 = vector.broadcast %cst_177 : f32 to vector<16x1xf32>
    %366 = arith.divf %364, %365 : vector<16x1xf32>
    %367 = vector.broadcast %366 : vector<16x1xf32> to vector<16x32xf32>
    %368 = arith.subf %360, %367 : vector<16x32xf32>
    %369 = vector.broadcast %366 : vector<16x1xf32> to vector<16x32xf32>
    %370 = arith.subf %360, %369 : vector<16x32xf32>
    %371 = arith.mulf %368, %370 : vector<16x32xf32>
    %cst_178 = arith.constant dense<0.000000e+00> : vector<16xf32>
    %372 = vector.multi_reduction <add>, %371, %cst_178 [1] : vector<16x32xf32> to vector<16xf32>
    %373 = vector.shape_cast %372 : vector<16xf32> to vector<16x1xf32>
    %cst_179 = arith.constant 3.200000e+01 : f32
    %374 = vector.broadcast %cst_179 : f32 to vector<16x1xf32>
    %375 = arith.divf %373, %374 : vector<16x1xf32>
    %376 = vector.broadcast %366 : vector<16x1xf32> to vector<16x32xf32>
    %377 = arith.subf %360, %376 : vector<16x32xf32>
    %cst_180 = arith.constant 9.99999974E-6 : f32
    %378 = vector.broadcast %cst_180 : f32 to vector<16x1xf32>
    %379 = arith.addf %375, %378 : vector<16x1xf32>
    %380 = math.rsqrt %379 : vector<16x1xf32>
    %381 = vector.broadcast %380 : vector<16x1xf32> to vector<16x32xf32>
    %382 = arith.mulf %377, %381 : vector<16x32xf32>
    %383 = vector.broadcast %361 : vector<1x32xf32> to vector<16x32xf32>
    %384 = arith.mulf %382, %383 : vector<16x32xf32>
    %385 = vector.broadcast %362 : vector<1x32xf32> to vector<16x32xf32>
    %386 = arith.addf %384, %385 : vector<16x32xf32>
    %c0_181 = arith.constant 0 : index
    %c0_182 = arith.constant 0 : index
    %387 = vector.load %arg14[%c0_181, %c0_182] : memref<16x32xf32, #tpu.memory_space<vmem>>, vector<16x32xf32>
    tpu.vector_store %arg14[%c0_181, %c0_182], %386 {strides = array<i32>} : memref<16x32xf32, #tpu.memory_space<vmem>>, vector<16x32xf32>,
    return
  }
  func.func @transform_0(%arg0: i32) -> (i32, i32) {
    %c0_i32 = arith.constant 0 : i32
    %c0_i32_0 = arith.constant 0 : i32
    %c0_i32_1 = arith.constant 0 : i32
    return %c0_i32, %c0_i32_0 : i32, i32
  }
  func.func @transform_1(%arg0: i32) -> (i32, i32) {
    %c0_i32 = arith.constant 0 : i32
    %c0_i32_0 = arith.constant 0 : i32
    %c0_i32_1 = arith.constant 0 : i32
    return %c0_i32, %c0_i32_0 : i32, i32
  }
  func.func @transform_2(%arg0: i32) -> (i32, i32) {
    %c0_i32 = arith.constant 0 : i32
    %c0_i32_0 = arith.constant 0 : i32
    %c0_i32_1 = arith.constant 0 : i32
    return %c0_i32, %c0_i32_0 : i32, i32
  }
  func.func @transform_3(%arg0: i32) -> (i32, i32, i32) {
    %c0_i32 = arith.constant 0 : i32
    %c0_i32_0 = arith.constant 0 : i32
    %c0_i32_1 = arith.constant 0 : i32
    %c0_i32_2 = arith.constant 0 : i32
    return %c0_i32, %c0_i32_0, %c0_i32_1 : i32, i32, i32
  }
  func.func @transform_4(%arg0: i32) -> (i32, i32, i32) {
    %c0_i32 = arith.constant 0 : i32
    %c0_i32_0 = arith.constant 0 : i32
    %c0_i32_1 = arith.constant 0 : i32
    %c0_i32_2 = arith.constant 0 : i32
    return %c0_i32, %c0_i32_0, %c0_i32_1 : i32, i32, i32
  }
  func.func @transform_5(%arg0: i32) -> (i32, i32, i32) {
    %c0_i32 = arith.constant 0 : i32
    %c0_i32_0 = arith.constant 0 : i32
    %c0_i32_1 = arith.constant 0 : i32
    %c0_i32_2 = arith.constant 0 : i32
    return %c0_i32, %c0_i32_0, %c0_i32_1 : i32, i32, i32
  }
  func.func @transform_6(%arg0: i32) -> (i32, i32, i32) {
    %c0_i32 = arith.constant 0 : i32
    %c0_i32_0 = arith.constant 0 : i32
    %c0_i32_1 = arith.constant 0 : i32
    %c0_i32_2 = arith.constant 0 : i32
    return %c0_i32, %c0_i32_0, %c0_i32_1 : i32, i32, i32
  }
  func.func @transform_7(%arg0: i32) -> (i32, i32, i32) {
    %c0_i32 = arith.constant 0 : i32
    %c0_i32_0 = arith.constant 0 : i32
    %c0_i32_1 = arith.constant 0 : i32
    %c0_i32_2 = arith.constant 0 : i32
    return %c0_i32, %c0_i32_0, %c0_i32_1 : i32, i32, i32
  }
  func.func @transform_8(%arg0: i32) -> (i32, i32, i32) {
    %c0_i32 = arith.constant 0 : i32
    %c0_i32_0 = arith.constant 0 : i32
    %c0_i32_1 = arith.constant 0 : i32
    %c0_i32_2 = arith.constant 0 : i32
    return %c0_i32, %c0_i32_0, %c0_i32_1 : i32, i32, i32
  }
  func.func @transform_9(%arg0: i32) -> (i32, i32, i32) {
    %c0_i32 = arith.constant 0 : i32
    %c0_i32_0 = arith.constant 0 : i32
    %c0_i32_1 = arith.constant 0 : i32
    %c0_i32_2 = arith.constant 0 : i32
    return %c0_i32, %c0_i32_0, %c0_i32_1 : i32, i32, i32
  }
  func.func @transform_10(%arg0: i32) -> (i32, i32, i32) {
    %c0_i32 = arith.constant 0 : i32
    %c0_i32_0 = arith.constant 0 : i32
    %c0_i32_1 = arith.constant 0 : i32
    %c0_i32_2 = arith.constant 0 : i32
    return %c0_i32, %c0_i32_0, %c0_i32_1 : i32, i32, i32
  }
  func.func @transform_11(%arg0: i32) -> (i32, i32, i32) {
    %c0_i32 = arith.constant 0 : i32
    %c0_i32_0 = arith.constant 0 : i32
    %c0_i32_1 = arith.constant 0 : i32
    %c0_i32_2 = arith.constant 0 : i32
    return %c0_i32, %c0_i32_0, %c0_i32_1 : i32, i32, i32
  }
  func.func @transform_12(%arg0: i32) -> (i32, i32) {
    %c0_i32 = arith.constant 0 : i32
    %c0_i32_0 = arith.constant 0 : i32
    %c0_i32_1 = arith.constant 0 : i32
    return %c0_i32, %c0_i32_0 : i32, i32
  }
  func.func @transform_13(%arg0: i32) -> (i32, i32) {
    %c0_i32 = arith.constant 0 : i32
    %c0_i32_0 = arith.constant 0 : i32
    %c0_i32_1 = arith.constant 0 : i32
    return %c0_i32, %c0_i32_0 : i32, i32
  }
}

</mosaic_0001>

<bundles_post_ra>
// kernel: tpu_custom_call.1
= control target key start
LH: loop header
LB: loop body
LE: loop exit
PB: predicated region body
PF: predicated region fallthrough
CT: control target
= control target key end

     0   :  { %18 = vsyncpa [#allocation3], 0  ;;  %s2487_s0 = inlined_call_operand.vmem [shape: f32[16,32], index: 0, kind: input, shape index: {}]   ;;  %s2488_s1 = inlined_call_operand.hbm [shape: f32[16,32], index: 1, kind: input, shape index: {}]   ;;  %s2489_s2 = inlined_call_operand.hbm [shape: f32[16,16], index: 2, kind: input, shape index: {}]   ;;  %s2490_s3 = inlined_call_operand.vmem [shape: f32[4,1,32], index: 3, kind: input, shape index: {}]   ;;  %s2491_s4 = inlined_call_operand.vmem [shape: f32[2,32,64], index: 4, kind: input, shape index: {}]   ;;  %s2492_s5 = inlined_call_operand.vmem [shape: f32[2,1,64], index: 5, kind: input, shape index: {}]   ;;  %s2493_s6 = inlined_call_operand.vmem [shape: f32[2,32,32], index: 6, kind: input, shape index: {}]   ;;  %s2494_s7 = inlined_call_operand.vmem [shape: f32[2,32,32], index: 7, kind: input, shape index: {}]   ;;  %s2495_s8 = inlined_call_operand.hbm [shape: f32[2,32,64], index: 8, kind: input, shape index: {}]   ;;  %s2496_s9 = inlined_call_operand.vmem [shape: f32[2,1,64], index: 9, kind: input, shape index: {}]   ;;  %s2497_s10 = inlined_call_operand.vmem [shape: f32[2,64,32], index: 10, kind: input, shape index: {}]   ;;  %s2498_s11 = inlined_call_operand.vmem [shape: f32[2,7,32], index: 11, kind: input, shape index: {}]   ;;  %s2499_s12 = inlined_call_operand.vmem [shape: f32[2,32], index: 12, kind: input, shape index: {}]   ;;  %s2500_s13 = inlined_call_operand.hbm [shape: f32[16,32], index: 13, kind: output, shape index: {}]  }
   0x1   :  { %19 = vsyncpa [#allocation6], 0 }
   0x2   :  { %20 = vsyncpa [#allocation4], 0  ;;  %s40_s27 = sshll.u32 %s2489_s2, 4  ;;  %s1864_s28 = smov [#allocation5]   ;;  %s41_s27 = int_to_ptr.hbm [resolvable:$true] %s40_s27 }
   0x3   :  { %s42_s29 = sshll.u32 %s1864_s28, 4  ;;  %s27_s15 = sshll.u32 %s2488_s1, 4  ;;  %s43_s29 = int_to_ptr.vmem [resolvable:$true] %s42_s29  ;;  %s28_s15 = int_to_ptr.hbm [resolvable:$true] %s27_s15 }
   0x4   :  { %s1865_s16 = smov 128   ;;  %s1866_s17 = smov 8  }
   0x5   :  { %48 = dma.hbm_to_vmem [thread:$0]  %s41_s27, 256, %s43_s29, [#allocation6], %s1865_s16, %s1865_s16, %s1866_s17  }
   0x6   :  { %s1867_s18 = smov [#allocation2]   ;;  %s63_s2 = sshll.u32 %s2495_s8, 4  ;;  %s64_s2 = int_to_ptr.hbm [resolvable:$true] %s63_s2 }
   0x7   :  { %s29_s19 = sshll.u32 %s1867_s18, 4  ;;  %s1868_s1 = smov [#allocation7]   ;;  %s30_s19 = int_to_ptr.vmem [resolvable:$true] %s29_s19 }
   0x8   :  { %35 = dma.hbm_to_vmem [thread:$0]  %s28_s15, 256, %s30_s19, [#allocation3], %s1865_s16, %s1865_s16, %s1866_s17  }
   0x9   :  { %s65_s22 = sshll.u32 %s1868_s1, 4  ;;  %s66_s22 = int_to_ptr.vmem [resolvable:$true] %s65_s22 }
   0xa   :  { %71 = dma.hbm_to_vmem [thread:$0]  %s64_s2, 1024, %s66_s22, [#allocation6], %s1865_s16, %s1865_s16, %s1866_s17  }
   0xb   :  { %1858 = dma.done.wait [#allocation3], 256  }
   0xc   :  { %1859 = vsyncadd [#allocation3], 4294967040 }
   0xd   :  { %1860 = dma.done.wait [#allocation6], 1280  }
   0xe   :  { %1861 = vsyncadd [#allocation6], 4294966016  ;;  %v110_v0 = vld [vmem:[%s2491_s4 + $0x18] sm:$0xff]  ;;  %v109_v1 = vld [vmem:[%s2491_s4 + $0x10] sm:$0xff]  ;;  %vm115_vm0 = vcmask 261120   ;;  %s1870_s26 = smov 96  }
   0xf   :  { %134 = vmatpush.msra.mxu0 %v110_v0  ;;  %1635 = vmatpush.msra.mxu2 %v110_v0  ;;  %v108_v2 = vld [vmem:[%s2491_s4 + $0x8] sm:$0xff]  ;;  %v1973_v3 = vld [vmem:[%s2487_s0] sm:$0xff]  ;;  %v148_v11 = vld [vmem:[%s2493_s6 + $0x18] sm:$0xff]  ;;  %vm227_vm1 = vcmask 130048   ;;  %vm714_vm9 = vcmask 523264   ;;  %s1872_s29 = smov [#allocation8]  }
  0x10   :  { %v1975_v4 = vld [vmem:[#allocation2] sm:$0xff]  ;;  %v1980_v5 = vld [vmem:[%s2487_s0 + $0x8] sm:$0xff]  ;;  %s1869_s0 = smov 32   ;;  %v147_v12 = vld [vmem:[%s2493_s6 + $0x10] sm:$0xff]  ;;  %1639 = vmatpush.msra.mxu3 %v148_v11  ;;  %168 = vmatpush.msra.mxu1 %v148_v11 }
  0x11   :  { %v1982_v6 = vld [vmem:[#allocation2 + $0x8] sm:$0xff]  ;;  %135 = vmatpush.msra.mxu0 %v109_v1  ;;  %1636 = vmatpush.msra.mxu2 %v109_v1  ;;  %v107_v7 = vld [vmem:[%s2491_s4] sm:$0xff]  ;;  %v105_v9 = vadd.f32 %v1975_v4, %v1973_v3  ;;  %v2079_v42 = vld [vmem:[#allocation5] sm:$0xff] }
  0x12   :  { %v1990_v8 = vld [vmem:[%s2490_s3 + $0x1] ss:$0 sm:$0xff]  ;;  %v106_v10 = vadd.f32 %v1982_v6, %v1980_v5  ;;  %v146_v13 = vld [vmem:[%s2493_s6 + $0x8] sm:$0xff]  ;;  %1640 = vmatpush.msra.mxu3 %v147_v12  ;;  %169 = vmatpush.msra.mxu1 %v147_v12  ;;  %v1653_v14 = vld [vmem:[%s2492_s5] ss:$0 sm:$0xff] }
  0x13   :  { %136 = vmatpush.msra.mxu0 %v108_v2  ;;  %1637 = vmatpush.msra.mxu2 %v108_v2  ;;  %v2026_v22 = vld [vmem:[%s2490_s3] ss:$0 sm:$0xff]  ;;  %v2034_v23 = vld [vmem:[%s2490_s3 + $0x2] ss:$0 sm:$0xff]  ;;  %v2039_v24 = vld [vmem:[%s2490_s3 + $0x3] ss:$0 sm:$0xff] }
  0x14   :  { %257 = vrot.lane.b32.xlu0 %v1990_v8, %s1869_s0  ;;  %1641 = vmatpush.msra.mxu3 %v146_v13  ;;  %v145_v25 = vld [vmem:[%s2493_s6] sm:$0xff]  ;;  %v2083_v46 = vld [vmem:[#allocation5 + $0x8] sm:$0xff] }
  0x15   :  { %137 = vmatpush.msra.mxu0 %v107_v7  ;;  %1638 = vmatpush.msra.mxu2 %v107_v7  ;;  %v1657_v32 = vld [vmem:[%s2498_s11] ss:$0 sm:$0xff] }
  0x16   :  { %1535 = vmatmul.msk.f32.vlgmr.msra.gmra.mxu0 %vm115_vm0, %v105_v9  ;;  %1536 = vmatmul.msk.f32.vlgmr.msra.gmra.mxu2 %vm115_vm0, %v106_v10 }
  0x17   :  { %170 = vmatpush.msra.mxu1 %v146_v13  ;;  %1642 = vmatpush.msra.mxu3 %v145_v25 }
  0x18   :  { %1538 = vmatmul.msk.f32.vlgmr.msra.gmra.mxu3 %vm115_vm0, %v1980_v5 }
  0x19   :  { %171 = vmatpush.msra.mxu1 %v145_v25 }
  0x1a   :  { %1537 = vmatmul.msk.f32.vlgmr.msra.gmra.mxu1 %vm115_vm0, %v1973_v3 }
  0x86   :  { %v2012_v16 = vpop.permute.xlu0 %257 }
  0x93   :  { %v139_v15 = vpop.f32.mrf.mxu0 }
  0x94   :  { %v2014_v17 = vadd.f32 %v1653_v14, %v139_v15 }
  0x96   :  { %v260_v18 = vmul.f32 %v2012_v16, %v2014_v17 }
  0x97   :  { %v173_v34 = vpop.f32.mrf.mxu1 }
  0x98   :  { %264 = vrot.lane.b32.xlu1 %v260_v18, %s1870_s26  ;;  %v2071_v36 = vadd.f32 %v1657_v32, %v173_v34 }
  0x99   :  { %v142_v19 = vpop.f32.mrf.mxu2 }
  0x9a   :  { %v2019_v20 = vadd.f32 %v1653_v14, %v142_v19  ;;  %v250_v38 = vmul.f32 %v2026_v22, %v2071_v36  ;;  %v317_v55 = vmul.f32 %v1990_v8, %v2071_v36  ;;  %v442_v13 = vmul.f32 %v2034_v23, %v2071_v36 }
  0x9b   :  { %v176_v33 = vpop.f32.mrf.mxu3  ;;  %v540_v14 = vmul.f32 %v2039_v24, %v2071_v36 }
  0x9c   :  { %v261_v21 = vmul.f32 %v2012_v16, %v2019_v20  ;;  %v177_v35 = vadd.f32 %v1657_v32, %v176_v33 }
  0x9e   :  { %266 = vrot.lane.b32.xlu0 %v261_v21, %s1870_s26  ;;  %v251_v37 = vmul.f32 %v2026_v22, %v177_v35  ;;  %v318_v39 = vmul.f32 %v1990_v8, %v177_v35  ;;  %v443_v40 = vmul.f32 %v2034_v23, %v177_v35  ;;  %v541_v41 = vmul.f32 %v2039_v24, %v177_v35 }
  0xa0   :  { %183 = vrot.lane.b32.xlu1 %v2026_v22, %s1869_s0  ;;  %368 = vmatpush.msrb.mxu1 %v251_v37 }
  0xa1   :  { %339 = vmatpush.msrb.mxu0 %v318_v39 }
  0xa2   :  { %369 = vmatpush.msrb.mxu1 %v250_v38 }
  0xa3   :  { %340 = vmatpush.msrb.mxu0 %v317_v55 }
  0xa4   :  { %562 = vmatpush.msra.mxu1 %v541_v41 }
  0xa6   :  { %382 = vrot.lane.b32.xlu0 %v2034_v23, %s1869_s0  ;;  %563 = vmatpush.msra.mxu1 %v540_v14 }
  0xa8   :  { %480 = vrot.lane.b32.xlu1 %v2039_v24, %s1869_s0 }
 0x10a   :  { %v265_v26 = vpop.permute.xlu1 %264 }
 0x110   :  { %v267_v27 = vpop.permute.xlu0 %266 }
 0x111   :  { %1544 = vmatpush.xpose.msk.msrb.mxu3 %vm115_vm0, %v267_v27 }
 0x112   :  { %v2053_v28 = vpop.permute.xlu1 %183 }
 0x113   :  { %v186_v29 = vmul.f32 %v2053_v28, %v2014_v17  ;;  %v187_v50 = vmul.f32 %v2053_v28, %v2019_v20 }
 0x115   :  { %1545 = vmatpush.xpose.msk.msrb.mxu3 %vm115_vm0, %v265_v26  ;;  %190 = vrot.lane.b32.xlu0 %v186_v29, %s1870_s26 }
 0x118   :  { %v2059_v30 = vpop.permute.xlu0 %382  ;;  %1546 = vmatmul.msk.f32.vlgmr.msrb.gmra.mxu3 %vm115_vm0, %v2014_v17 }
 0x119   :  { %v386_v31 = vmul.f32 %v2059_v30, %v2019_v20  ;;  %464 = vmatpush.msra.mxu3 %v443_v40  ;;  %v385_v51 = vmul.f32 %v2059_v30, %v2014_v17 }
 0x11a   :  { %v2093_v52 = vpop.permute.xlu1 %480 }
 0x11b   :  { %v484_v53 = vmul.f32 %v2093_v52, %v2019_v20  ;;  %v483_v54 = vmul.f32 %v2093_v52, %v2014_v17  ;;  %465 = vmatpush.msra.mxu3 %v442_v13 }
 0x11d   :  { %391 = vrot.lane.b32.xlu0 %v386_v31, %s1870_s26 }
 0x120   :  { %1547 = vmatmul.msk.f32.gmra.mxu3 %vm115_vm0, %v2019_v20 }
 0x187   :  { %v191_v62 = vpop.permute.xlu0 %190 }
 0x18f   :  { %v392_v9 = vpop.permute.xlu0 %391 }
 0x19b   :  { %v289_v43 = vpop.f32.mrf.mxu3 }
 0x19c   :  { %v290_v44 = vadd.f32 %v289_v43, %v2079_v42 }
 0x19e   :  { %v295_v45 = vsel %vm227_vm1, %v290_v44, -inf }
 0x19f   :  { %296 = vmax.xlane.f32.xlu2 %v295_v45 }
 0x1a3   :  { %v292_v47 = vpop.f32.mrf.mxu3 }
 0x1a4   :  { %v293_v48 = vadd.f32 %v292_v47, %v2083_v46 }
 0x1a6   :  { %v298_v49 = vsel %vm227_vm1, %v293_v48, -inf }
 0x1a7   :  { %299 = vmax.xlane.f32.xlu2 %v298_v49 }
 0x1bf   :  { %192 = vrot.lane.b32.xlu2 %v187_v50, %s1870_s26 }
 0x1c7   :  { %389 = vrot.lane.b32.xlu2 %v385_v51, %s1870_s26 }
 0x1cf   :  { %489 = vrot.lane.b32.xlu2 %v484_v53, %s1870_s26 }
 0x1d7   :  { %487 = vrot.lane.b32.xlu2 %v483_v54, %s1870_s26 }
 0x212   :  { %v297_v56 = vpop.xlane.xlu2 %296 }
 0x213   :  { %v301_v57 = vsub.f32 %v290_v44, %v297_v56 }
 0x215   :  { %v303_v58 = vmul.f32 1.442695, %v301_v57 }
 0x217   :  { %1676 = vpow2.f32 %v303_v58 }
 0x21a   :  { %v300_v59 = vpop.xlane.xlu2 %299 }
 0x21b   :  { %v302_v60 = vsub.f32 %v293_v48, %v300_v59 }
 0x21d   :  { %v1677_v61 = vpop.eup %1676  ;;  %v305_v63 = vmul.f32 1.442695, %v302_v60 }
 0x21e   :  { %v307_v0 = vsel %vm227_vm1, %v1677_v61, 0.0 }
 0x21f   :  { %1678 = vpow2.f32 %v305_v63  ;;  %308 = vadd.xlane.f32.xlu1 %v307_v0 }
 0x222   :  { %v193_v1 = vpop.permute.xlu2 %192 }
 0x223   :  { %1539 = vmatpush.xpose.msk.msrb.mxu2 %vm115_vm0, %v193_v1 }
 0x225   :  { %v1679_v2 = vpop.eup %1678 }
 0x226   :  { %v310_v7 = vsel %vm227_vm1, %v1679_v2, 0.0 }
 0x227   :  { %311 = vadd.xlane.f32.xlu0 %v310_v7  ;;  %1540 = vmatpush.xpose.msk.msrb.mxu2 %vm115_vm0, %v191_v62 }
 0x22a   :  { %v390_v10 = vpop.permute.xlu2 %389  ;;  %1541 = vmatmul.msk.f32.vlgmr.msrb.gmra.mxu2 %vm115_vm0, %v2014_v17 }
 0x22b   :  { %1553 = vmatpush.xpose.msk.msra.mxu2 %vm115_vm0, %v392_v9 }
 0x22f   :  { %1554 = vmatpush.xpose.msk.msra.mxu2 %vm115_vm0, %v390_v10 }
 0x232   :  { %1542 = vmatmul.msk.f32.gmra.mxu2 %vm115_vm0, %v2019_v20  ;;  %v490_v11 = vpop.permute.xlu2 %489 }
 0x233   :  { %1560 = vmatpush.xpose.msk.msra.mxu0 %vm115_vm0, %v490_v11 }
 0x23a   :  { %1555 = vmatmul.msk.f32.vlgmr.msra.gmra.mxu2 %vm115_vm0, %v2014_v17  ;;  %v488_v12 = vpop.permute.xlu2 %487 }
 0x23b   :  { %1561 = vmatpush.xpose.msk.msra.mxu0 %vm115_vm0, %v488_v12 }
 0x242   :  { %1556 = vmatmul.msk.f32.gmra.mxu2 %vm115_vm0, %v2019_v20 }
 0x292   :  { %v309_v15 = vpop.xlane.xlu1 %308 }
 0x293   :  { %1680 = vrcp.f32 %v309_v15 }
 0x299   :  { %v1681_v18 = vpop.eup %1680 }
 0x29a   :  { %v312_v19 = vpop.xlane.xlu0 %311  ;;  %v315_v21 = vmul.f32 %v1681_v18, %v1677_v61 }
 0x29b   :  { %1682 = vrcp.f32 %v312_v19 }
 0x29c   :  { %1548 = vmatmul.msk.f32.vlgmr.msrb.gmra.mxu0 %vm227_vm1, %v315_v21 }
 0x2a1   :  { %v1683_v25 = vpop.eup %1682 }
 0x2a2   :  { %v316_v26 = vmul.f32 %v1683_v25, %v1679_v2 }
 0x2a4   :  { %1549 = vmatmul.msk.f32.gmra.mxu0 %vm227_vm1, %v316_v26 }
 0x2ac   :  { %1562 = vmatmul.msk.f32.vlgmr.msra.gmra.mxu0 %vm115_vm0, %v2014_v17 }
 0x2ad   :  { %v221_v27 = vpop.f32.mrf.mxu2 }
 0x2ae   :  { %v222_v29 = vadd.f32 %v221_v27, %v2079_v42 }
 0x2b0   :  { %v228_v31 = vsel %vm227_vm1, %v222_v29, -inf }
 0x2b1   :  { %229 = vmax.xlane.f32.xlu2 %v228_v31 }
 0x2b4   :  { %1563 = vmatmul.msk.f32.gmra.mxu0 %vm115_vm0, %v2019_v20 }
 0x2b5   :  { %v224_v32 = vpop.f32.mrf.mxu2 }
 0x2b6   :  { %v225_v33 = vadd.f32 %v224_v32, %v2083_v46 }
 0x2b8   :  { %v231_v34 = vsel %vm227_vm1, %v225_v33, -inf }
 0x2b9   :  { %232 = vmax.xlane.f32.xlu1 %v231_v34 }
 0x2bd   :  { %v414_v35 = vpop.f32.mrf.mxu2 }
 0x2be   :  { %v415_v36 = vadd.f32 %v414_v35, %v2079_v42 }
 0x2c0   :  { %v420_v17 = vsel %vm227_vm1, %v415_v36, -inf }
 0x2c1   :  { %421 = vmax.xlane.f32.xlu1 %v420_v17 }
 0x2c5   :  { %v417_v37 = vpop.f32.mrf.mxu2 }
 0x2c6   :  { %v418_v38 = vadd.f32 %v417_v37, %v2083_v46 }
 0x2c8   :  { %v423_v39 = vsel %vm227_vm1, %v418_v38, -inf }
 0x2c9   :  { %424 = vmax.xlane.f32.xlu0 %v423_v39 }
 0x319   :  { %v2137_v40 = vpop.f32.mrf.mxu0 }
 0x321   :  { %v2139_v20 = vpop.f32.mrf.mxu0 }
 0x324   :  { %v230_v41 = vpop.xlane.xlu2 %229 }
 0x325   :  { %v234_v43 = vsub.f32 %v222_v29, %v230_v41 }
 0x327   :  { %v236_v44 = vmul.f32 1.442695, %v234_v43 }
 0x329   :  { %v512_v45 = vpop.f32.mrf.mxu0  ;;  %1684 = vpow2.f32 %v236_v44 }
 0x32a   :  { %v513_v47 = vadd.f32 %v512_v45, %v2079_v42 }
 0x32c   :  { %v233_v48 = vpop.xlane.xlu1 %232  ;;  %v518_v49 = vsel %vm227_vm1, %v513_v47, -inf }
 0x32d   :  { %v235_v50 = vsub.f32 %v225_v33, %v233_v48  ;;  %519 = vmax.xlane.f32.xlu1 %v518_v49  ;;  %v575_v48 = vld [vmem:[%s2494_s7 + $0x10] sm:$0xff] }
 0x32f   :  { %v238_v51 = vmul.f32 1.442695, %v235_v50  ;;  %v1685_v53 = vpop.eup %1684 }
 0x330   :  { %v240_v58 = vsel %vm227_vm1, %v1685_v53, 0.0 }
 0x331   :  { %v515_v54 = vpop.f32.mrf.mxu0  ;;  %1686 = vpow2.f32 %v238_v51  ;;  %v574_v51 = vld [vmem:[%s2494_s7 + $0x8] sm:$0xff] }
 0x332   :  { %v516_v55 = vadd.f32 %v515_v54, %v2083_v46 }
 0x334   :  { %v422_v56 = vpop.xlane.xlu1 %421  ;;  %v521_v57 = vsel %vm227_vm1, %v516_v55, -inf }
 0x335   :  { %v426_v59 = vsub.f32 %v415_v36, %v422_v56  ;;  %522 = vmax.xlane.f32.xlu0 %v521_v57  ;;  %241 = vadd.xlane.f32.xlu1 %v240_v58 }
 0x337   :  { %v428_v60 = vmul.f32 1.442695, %v426_v59  ;;  %v1687_v61 = vpop.eup %1686 }
 0x338   :  { %v243_v63 = vsel %vm227_vm1, %v1687_v61, 0.0 }
 0x339   :  { %1688 = vpow2.f32 %v428_v60 }
 0x33c   :  { %v425_v62 = vpop.xlane.xlu0 %424 }
 0x33d   :  { %v427_v0 = vsub.f32 %v418_v38, %v425_v62  ;;  %244 = vadd.xlane.f32.xlu0 %v243_v63 }
 0x33f   :  { %v1689_v1 = vpop.eup %1688  ;;  %v430_v2 = vmul.f32 1.442695, %v427_v0 }
 0x340   :  { %v432_v7 = vsel %vm227_vm1, %v1689_v1, 0.0 }
 0x341   :  { %1690 = vpow2.f32 %v430_v2  ;;  %433 = vadd.xlane.f32.xlu1 %v432_v7  ;;  %v1658_v2 = vld [vmem:[%s2498_s11 + $0x1] ss:$0 sm:$0xff] }
 0x347   :  { %v1691_v9 = vpop.eup %1690 }
 0x348   :  { %v435_v10 = vsel %vm227_vm1, %v1691_v9, 0.0 }
 0x349   :  { %436 = vadd.xlane.f32.xlu2 %v435_v10 }
 0x3a0   :  { %v520_v11 = vpop.xlane.xlu1 %519 }
 0x3a1   :  { %v524_v12 = vsub.f32 %v513_v47, %v520_v11  ;;  %v576_v47 = vld [vmem:[%s2494_s7 + $0x18] sm:$0xff] }
 0x3a2   :  { %596 = vmatpush.msrb.mxu2 %v576_v47  ;;  %v711_v47 = vld [vmem:[%s2497_s10 + $0x30] sm:$0xff] }
 0x3a3   :  { %v526_v13 = vmul.f32 1.442695, %v524_v12 }
 0x3a4   :  { %597 = vmatpush.msrb.mxu2 %v575_v48  ;;  %v710_v48 = vld [vmem:[%s2497_s10 + $0x28] sm:$0xff] }
 0x3a5   :  { %1692 = vpow2.f32 %v526_v13 }
 0x3a6   :  { %598 = vmatpush.msrb.mxu2 %v574_v51  ;;  %v709_v51 = vld [vmem:[%s2497_s10 + $0x20] sm:$0xff] }
 0x3a8   :  { %v523_v14 = vpop.xlane.xlu0 %522  ;;  %v242_v15 = vpop.xlane.xlu1 %241 }
 0x3a9   :  { %v525_v18 = vsub.f32 %v516_v55, %v523_v14  ;;  %1694 = vrcp.f32 %v242_v15  ;;  %v1871_v14 = vmov 32.0  }
 0x3ab   :  { %v1693_v19 = vpop.eup %1692  ;;  %v528_v21 = vmul.f32 1.442695, %v525_v18 }
 0x3ac   :  { %v530_v25 = vsel %vm227_vm1, %v1693_v19, 0.0 }
 0x3ad   :  { %1696 = vpow2.f32 %v528_v21  ;;  %531 = vadd.xlane.f32.xlu0 %v530_v25 }
 0x3af   :  { %v1695_v26 = vpop.eup %1694 }
 0x3b0   :  { %v245_v27 = vpop.xlane.xlu0 %244  ;;  %v248_v29 = vmul.f32 %v1695_v26, %v1685_v53  ;;  %v573_v53 = vld [vmem:[%s2494_s7] sm:$0xff] }
 0x3b1   :  { %1698 = vrcp.f32 %v245_v27  ;;  %599 = vmatpush.msrb.mxu2 %v573_v53 }
 0x3b2   :  { %1550 = vmatmul.msk.f32.vlgmr.msrb.gmra.mxu1 %vm227_vm1, %v248_v29 }
 0x3b3   :  { %v1697_v31 = vpop.eup %1696 }
 0x3b4   :  { %v434_v32 = vpop.xlane.xlu1 %433  ;;  %v533_v33 = vsel %vm227_vm1, %v1697_v31, 0.0 }
 0x3b5   :  { %1700 = vrcp.f32 %v434_v32  ;;  %534 = vadd.xlane.f32.xlu1 %v533_v33 }
 0x3b7   :  { %v1699_v34 = vpop.eup %1698 }
 0x3b8   :  { %v249_v35 = vmul.f32 %v1699_v34, %v1687_v61 }
 0x3ba   :  { %1551 = vmatmul.msk.f32.gmra.mxu1 %vm227_vm1, %v249_v35 }
 0x3bb   :  { %v1701_v36 = vpop.eup %1700 }
 0x3bc   :  { %v440_v17 = vmul.f32 %v1701_v36, %v1689_v1  ;;  %v437_v37 = vpop.xlane.xlu2 %436 }
 0x3bd   :  { %1702 = vrcp.f32 %v437_v37  ;;  %v668_v37 = vld [vmem:[#allocation7 + $0x10] sm:$0xff] }
 0x3be   :  { %1557 = vmatmul.msk.f32.vlgmr.msra.gmra.mxu3 %vm227_vm1, %v440_v17  ;;  %v669_v17 = vld [vmem:[#allocation7 + $0x18] sm:$0xff] }
 0x3bf   :  { %692 = vmatpush.msrb.mxu3 %v669_v17 }
 0x3c1   :  { %693 = vmatpush.msrb.mxu3 %v668_v37 }
 0x3c3   :  { %v1703_v38 = vpop.eup %1702 }
 0x3c4   :  { %v441_v39 = vmul.f32 %v1703_v38, %v1691_v9  ;;  %v667_v38 = vld [vmem:[#allocation7 + $0x8] sm:$0xff] }
 0x3c5   :  { %694 = vmatpush.msrb.mxu3 %v667_v38 }
 0x3c6   :  { %1558 = vmatmul.msk.f32.gmra.mxu3 %vm227_vm1, %v441_v39  ;;  %v666_v39 = vld [vmem:[#allocation7] sm:$0xff] }
 0x3c7   :  { %695 = vmatpush.msrb.mxu3 %v666_v39 }
 0x420   :  { %v532_v41 = vpop.xlane.xlu0 %531 }
 0x421   :  { %1704 = vrcp.f32 %v532_v41 }
 0x427   :  { %v1705_v43 = vpop.eup %1704 }
 0x428   :  { %v538_v44 = vmul.f32 %v1705_v43, %v1693_v19  ;;  %v535_v45 = vpop.xlane.xlu1 %534 }
 0x429   :  { %1706 = vrcp.f32 %v535_v45  ;;  %v712_v45 = vld [vmem:[%s2497_s10 + $0x38] sm:$0xff] }
 0x42a   :  { %1564 = vmatmul.msk.f32.vlgmr.msra.gmra.mxu1 %vm227_vm1, %v538_v44  ;;  %1708 = vrcp.f32 %v1871_v14  ;;  %729 = vmatpush.msrb.mxu0 %v712_v45 }
 0x42c   :  { %730 = vmatpush.msrb.mxu0 %v711_v47 }
 0x42e   :  { %731 = vmatpush.msrb.mxu0 %v710_v48 }
 0x42f   :  { %v1707_v49 = vpop.eup %1706  ;;  %v371_v54 = vpop.f32.mrf.mxu1 }
 0x430   :  { %v539_v50 = vmul.f32 %v1707_v49, %v1697_v31  ;;  %v372_v57 = vadd.f32 %v371_v54, %v2137_v40  ;;  %v1709_v15 = vpop.eup %1708  ;;  %732 = vmatpush.msrb.mxu0 %v709_v51 }
 0x431   :  { %v616_v18 = vmul.f32 32.0, %v1709_v15  ;;  %vm620_vm2 = vweird.f32 %v1709_v15 }
 0x432   :  { %1565 = vmatmul.msk.f32.gmra.mxu1 %vm227_vm1, %v539_v50 }
 0x433   :  { %v617_v19 = vsub.f32 1.0, %v616_v18  ;;  %v707_v18 = vld [vmem:[%s2497_s10 + $0x10] sm:$0xff] }
 0x435   :  { %v618_v21 = vmul.f32 %v1709_v15, %v617_v19  ;;  %v706_v19 = vld [vmem:[%s2497_s10 + $0x8] sm:$0xff] }
 0x437   :  { %v374_v55 = vpop.f32.mrf.mxu1  ;;  %v619_v25 = vadd.f32 %v1709_v15, %v618_v21  ;;  %v705_v21 = vld [vmem:[%s2497_s10] sm:$0xff] }
 0x438   :  { %v375_v62 = vadd.f32 %v374_v55, %v2139_v20  ;;  %v708_v55 = vld [vmem:[%s2497_s10 + $0x18] sm:$0xff] }
 0x439   :  { %v2180_v26 = vsel %vm620_vm2, %v1709_v15, %v619_v25  ;;  %733 = vmatpush.msrb.mxu0 %v708_v55  ;;  %v1661_v25 = vld [vmem:[%s2496_s9] ss:$0 sm:$0xff]  ;;  %v1589_v55 = vld [vmem:[%s2493_s6 + $0x38] sm:$0xff] }
 0x43a   :  { %869 = vmatpush.msra.mxu2 %v1589_v55 }
 0x43b   :  { %734 = vmatpush.msrb.mxu0 %v707_v18  ;;  %v1663_v18 = vld [vmem:[%s2498_s11 + $0x5] ss:$0 sm:$0xff] }
 0x43d   :  { %735 = vmatpush.msrb.mxu0 %v706_v19 }
 0x43f   :  { %736 = vmatpush.msrb.mxu0 %v705_v21 }
 0x441   :  { %v467_v56 = vpop.f32.mrf.mxu3 }
 0x442   :  { %v473_v58 = vadd.f32 %v467_v56, %v372_v57 }
 0x449   :  { %v470_v61 = vpop.f32.mrf.mxu3 }
 0x44a   :  { %v474_v63 = vadd.f32 %v470_v61, %v375_v62 }
 0x4a7   :  { %v565_v59 = vpop.f32.mrf.mxu1 }
 0x4a8   :  { %v571_v60 = vadd.f32 %v565_v59, %v473_v58 }
 0x4aa   :  { %1566 = vmatmul.msk.f32.vlgmr.msrb.gmra.mxu2 %vm115_vm0, %v571_v60 }
 0x4af   :  { %v568_v0 = vpop.f32.mrf.mxu1 }
 0x4b0   :  { %v572_v1 = vadd.f32 %v568_v0, %v474_v63  ;;  %v1659_v63 = vld [vmem:[%s2498_s11 + $0x3] ss:$0 sm:$0xff] }
 0x4b2   :  { %1567 = vmatmul.msk.f32.gmra.mxu2 %vm115_vm0, %v572_v1 }
 0x52d   :  { %v601_v7 = vpop.f32.mrf.mxu2 }
 0x52e   :  { %v602_v9 = vadd.f32 %v1658_v2, %v601_v7  ;;  %v1660_v7 = vld [vmem:[%s2498_s11 + $0x4] ss:$0 sm:$0xff] }
 0x530   :  { %v607_v40 = vadd.f32 %v602_v9, %v1973_v3 }
 0x532   :  { %v609_v10 = vsel %vm115_vm0, %v607_v40, 0.0 }
 0x533   :  { %610 = vadd.xlane.f32.xlu2 %v609_v10 }
 0x535   :  { %v604_v11 = vpop.f32.mrf.mxu2 }
 0x536   :  { %v605_v12 = vadd.f32 %v1658_v2, %v604_v11 }
 0x538   :  { %v608_v20 = vadd.f32 %v605_v12, %v1980_v5 }
 0x53a   :  { %v612_v13 = vsel %vm115_vm0, %v608_v20, 0.0 }
 0x53b   :  { %613 = vadd.xlane.f32.xlu0 %v612_v13 }
 0x5a6   :  { %v611_v3 = vpop.xlane.xlu2 %610 }
 0x5a7   :  { %v622_v27 = vmul.f32 %v2180_v26, %v611_v3 }
 0x5a9   :  { %v624_v29 = vsub.f32 %v607_v40, %v622_v27 }
 0x5ab   :  { %v626_v31 = vmul.f32 %v624_v29, %v624_v29 }
 0x5ad   :  { %v628_v5 = vsel %vm115_vm0, %v626_v31, 0.0 }
 0x5ae   :  { %629 = vadd.xlane.f32.xlu1 %v628_v5  ;;  %v614_v32 = vpop.xlane.xlu0 %613 }
 0x5af   :  { %v623_v33 = vmul.f32 %v2180_v26, %v614_v32 }
 0x5b1   :  { %v625_v34 = vsub.f32 %v608_v20, %v623_v33  ;;  %v1662_v33 = vld [vmem:[%s2498_s11 + $0x2] ss:$0 sm:$0xff] }
 0x5b3   :  { %v627_v35 = vmul.f32 %v625_v34, %v625_v34 }
 0x5b5   :  { %v631_v36 = vsel %vm115_vm0, %v627_v35, 0.0 }
 0x5b6   :  { %632 = vadd.xlane.f32.xlu2 %v631_v36 }
 0x621   :  { %v630_v41 = vpop.xlane.xlu1 %629 }
 0x622   :  { %v634_v43 = vmul.f32 %v630_v41, %v2180_v26 }
 0x624   :  { %v636_v44 = vadd.f32 1e-05, %v634_v43 }
 0x626   :  { %1710 = vrsqrt.f32 %v636_v44  ;;  %vm644_vm4 = vweird.f32 %v636_v44 }
 0x629   :  { %v633_v49 = vpop.xlane.xlu2 %632 }
 0x62a   :  { %v635_v50 = vmul.f32 %v633_v49, %v2180_v26 }
 0x62c   :  { %v1711_v53 = vpop.eup %1710  ;;  %v637_v54 = vadd.f32 1e-05, %v635_v50 }
 0x62d   :  { %v639_v56 = vmul.f32 %v1711_v53, %v636_v44  ;;  %vm645_vm3 = vweird.f32 %v1711_v53 }
 0x62e   :  { %1712 = vrsqrt.f32 %v637_v54  ;;  %vm646_vm5 = vmor %vm644_vm4, %vm645_vm3  ;;  %vm654_vm7 = vweird.f32 %v637_v54 }
 0x62f   :  { %v640_v57 = vmul.f32 %v1711_v53, %v639_v56  ;;  %v1582_v56 = vld [vmem:[%s2491_s4 + $0x38] sm:$0xff] }
 0x630   :  { %834 = vmatpush.msrb.mxu1 %v1582_v56 }
 0x631   :  { %v641_v58 = vmul.f32 0.5, %v640_v57  ;;  %v1588_v57 = vld [vmem:[%s2493_s6 + $0x30] sm:$0xff] }
 0x632   :  { %870 = vmatpush.msra.mxu2 %v1588_v57 }
 0x633   :  { %v642_v59 = vsub.f32 1.5, %v641_v58  ;;  %v1581_v58 = vld [vmem:[%s2491_s4 + $0x30] sm:$0xff] }
 0x634   :  { %v1713_v60 = vpop.eup %1712  ;;  %835 = vmatpush.msrb.mxu1 %v1581_v58 }
 0x635   :  { %v643_v61 = vmul.f32 %v1711_v53, %v642_v59  ;;  %v649_v62 = vmul.f32 %v1713_v60, %v637_v54  ;;  %vm655_vm6 = vweird.f32 %v1713_v60  ;;  %v1587_v59 = vld [vmem:[%s2493_s6 + $0x28] sm:$0xff] }
 0x636   :  { %vm656_vm8 = vmor %vm654_vm7, %vm655_vm6  ;;  %871 = vmatpush.msra.mxu2 %v1587_v59 }
 0x637   :  { %v647_v0 = vsel %vm646_vm5, %v1711_v53, %v643_v61  ;;  %v650_v1 = vmul.f32 %v1713_v60, %v649_v62  ;;  %v1586_v61 = vld [vmem:[%s2493_s6 + $0x20] sm:$0xff] }
 0x638   :  { %v658_v2 = vmul.f32 %v647_v0, %v624_v29  ;;  %872 = vmatpush.msra.mxu2 %v1586_v61  ;;  %v1579_v62 = vld [vmem:[%s2491_s4 + $0x20] sm:$0xff] }
 0x639   :  { %v651_v9 = vmul.f32 0.5, %v650_v1 }
 0x63a   :  { %v661_v40 = vmul.f32 %v1659_v63, %v658_v2 }
 0x63b   :  { %v652_v10 = vsub.f32 1.5, %v651_v9 }
 0x63c   :  { %v664_v11 = vadd.f32 %v1660_v7, %v661_v40 }
 0x63d   :  { %v653_v12 = vmul.f32 %v1713_v60, %v652_v10 }
 0x63e   :  { %1568 = vmatmul.msk.f32.vlgmr.msrb.gmra.mxu3 %vm115_vm0, %v664_v11 }
 0x63f   :  { %v657_v20 = vsel %vm656_vm8, %v1713_v60, %v653_v12  ;;  %v1580_v60 = vld [vmem:[%s2491_s4 + $0x28] sm:$0xff]  ;;  %s1519_s4 = sshll.u32 %s1872_s29, 4  ;;  %s1520_s4 = int_to_ptr.vmem [resolvable:$true] %s1519_s4 }
 0x640   :  { %v659_v13 = vmul.f32 %v657_v20, %v625_v34  ;;  %836 = vmatpush.msrb.mxu1 %v1580_v60 }
 0x642   :  { %v662_v14 = vmul.f32 %v1659_v63, %v659_v13  ;;  %837 = vmatpush.msrb.mxu1 %v1579_v62 }
 0x644   :  { %v665_v15 = vadd.f32 %v1660_v7, %v662_v14 }
 0x646   :  { %1569 = vmatmul.msk.f32.gmra.mxu3 %vm115_vm0, %v665_v15 }
 0x6c1   :  { %v697_v3 = vpop.f32.mrf.mxu3 }
 0x6c2   :  { %v698_v27 = vadd.f32 %v1661_v25, %v697_v3  ;;  %v1664_v3 = vld [vmem:[%s2498_s11 + $0x6] ss:$0 sm:$0xff] }
 0x6c4   :  { %v703_v29 = vmax.f32 %v698_v27, 0.0 }
 0x6c6   :  { %1570 = vmatmul.msk.f32.vlgmr.msrb.gmra.mxu0 %vm714_vm9, %v703_v29 }
 0x6c9   :  { %v700_v31 = vpop.f32.mrf.mxu3 }
 0x6ca   :  { %v701_v5 = vadd.f32 %v1661_v25, %v700_v31 }
 0x6cc   :  { %v704_v32 = vmax.f32 %v701_v5, 0.0 }
 0x6ce   :  { %1571 = vmatmul.msk.f32.gmra.mxu0 %vm714_vm9, %v704_v32 }
 0x743   :  { %v738_v34 = vpop.f32.mrf.mxu0 }
 0x744   :  { %v739_v35 = vadd.f32 %v1662_v33, %v738_v34 }
 0x746   :  { %v744_v36 = vadd.f32 %v739_v35, %v664_v11 }
 0x748   :  { %v746_v17 = vsel %vm115_vm0, %v744_v36, 0.0 }
 0x749   :  { %747 = vadd.xlane.f32.xlu0 %v746_v17 }
 0x74b   :  { %v741_v37 = vpop.f32.mrf.mxu0 }
 0x74c   :  { %v742_v38 = vadd.f32 %v1662_v33, %v741_v37 }
 0x74e   :  { %v745_v39 = vadd.f32 %v742_v38, %v665_v15  ;;  %v1665_v38 = vld [vmem:[%s2492_s5 + $0x1] ss:$0 sm:$0xff] }
 0x750   :  { %v749_v41 = vsel %vm115_vm0, %v745_v39, 0.0 }
 0x751   :  { %750 = vadd.xlane.f32.xlu1 %v749_v41 }
 0x7bc   :  { %v748_v43 = vpop.xlane.xlu0 %747 }
 0x7bd   :  { %v752_v44 = vmul.f32 %v748_v43, %v2180_v26 }
 0x7bf   :  { %v754_v45 = vsub.f32 %v744_v36, %v752_v44 }
 0x7c1   :  { %v756_v47 = vmul.f32 %v754_v45, %v754_v45 }
 0x7c3   :  { %v758_v48 = vsel %vm115_vm0, %v756_v47, 0.0 }
 0x7c4   :  { %v751_v49 = vpop.xlane.xlu1 %750  ;;  %759 = vadd.xlane.f32.xlu2 %v758_v48 }
 0x7c5   :  { %v753_v50 = vmul.f32 %v751_v49, %v2180_v26 }
 0x7c7   :  { %v755_v51 = vsub.f32 %v745_v39, %v753_v50 }
 0x7c9   :  { %v757_v53 = vmul.f32 %v755_v51, %v755_v51 }
 0x7cb   :  { %v761_v54 = vsel %vm115_vm0, %v757_v53, 0.0 }
 0x7cc   :  { %762 = vadd.xlane.f32.xlu0 %v761_v54 }
 0x837   :  { %v760_v63 = vpop.xlane.xlu2 %759 }
 0x838   :  { %v764_v0 = vmul.f32 %v760_v63, %v2180_v26 }
 0x83a   :  { %v766_v1 = vadd.f32 1e-05, %v764_v0 }
 0x83c   :  { %1714 = vrsqrt.f32 %v766_v1  ;;  %vm774_vm11 = vweird.f32 %v766_v1 }
 0x83f   :  { %v763_v2 = vpop.xlane.xlu0 %762 }
 0x840   :  { %v765_v7 = vmul.f32 %v763_v2, %v2180_v26 }
 0x842   :  { %v1715_v9 = vpop.eup %1714  ;;  %v767_v40 = vadd.f32 1e-05, %v765_v7 }
 0x843   :  { %v769_v10 = vmul.f32 %v1715_v9, %v766_v1  ;;  %vm775_vm10 = vweird.f32 %v1715_v9 }
 0x844   :  { %1716 = vrsqrt.f32 %v767_v40  ;;  %vm776_vm12 = vmor %vm774_vm11, %vm775_vm10  ;;  %vm784_vm14 = vweird.f32 %v767_v40 }
 0x845   :  { %v770_v11 = vmul.f32 %v1715_v9, %v769_v10 }
 0x847   :  { %v771_v12 = vmul.f32 0.5, %v770_v11 }
 0x849   :  { %v772_v20 = vsub.f32 1.5, %v771_v12 }
 0x84a   :  { %v1717_v13 = vpop.eup %1716 }
 0x84b   :  { %v773_v14 = vmul.f32 %v1715_v9, %v772_v20  ;;  %v779_v15 = vmul.f32 %v1717_v13, %v767_v40  ;;  %vm785_vm13 = vweird.f32 %v1717_v13 }
 0x84c   :  { %vm786_vm15 = vmor %vm784_vm14, %vm785_vm13 }
 0x84d   :  { %v777_v19 = vsel %vm776_vm12, %v1715_v9, %v773_v14  ;;  %v780_v21 = vmul.f32 %v1717_v13, %v779_v15 }
 0x84e   :  { %v788_v25 = vmul.f32 %v777_v19, %v754_v45 }
 0x84f   :  { %v781_v27 = vmul.f32 0.5, %v780_v21 }
 0x850   :  { %v791_v29 = vmul.f32 %v1663_v18, %v788_v25 }
 0x851   :  { %v782_v31 = vsub.f32 1.5, %v781_v27 }
 0x852   :  { %v2266_v5 = vadd.f32 %v1664_v3, %v791_v29 }
 0x853   :  { %v783_v32 = vmul.f32 %v1717_v13, %v782_v31 }
 0x854   :  { %1590 = vmatmul.msk.f32.vlgmr.msra.gmra.mxu2 %vm115_vm0, %v2266_v5  ;;  %v804_v33 = vadd.f32 %v2266_v5, %v1975_v4 }
 0x855   :  { %v787_v34 = vsel %vm786_vm15, %v1717_v13, %v783_v32 }
 0x856   :  { %1584 = vmatmul.msk.f32.vlgmr.msrb.gmra.mxu1 %vm115_vm0, %v804_v33  ;;  %v789_v35 = vmul.f32 %v787_v34, %v755_v51 }
 0x858   :  { %v792_v36 = vmul.f32 %v1663_v18, %v789_v35 }
 0x85a   :  { %v2273_v17 = vadd.f32 %v1664_v3, %v792_v36 }
 0x85c   :  { %1591 = vmatmul.msk.f32.gmra.mxu2 %vm115_vm0, %v2273_v17  ;;  %v805_v37 = vadd.f32 %v2273_v17, %v1982_v6  ;;  %v1666_v6 = vld [vmem:[%s2498_s11 + $0x8] ss:$0 sm:$0xff] }
 0x85e   :  { %1585 = vmatmul.msk.f32.gmra.mxu1 %vm115_vm0, %v805_v37 }
 0x8d3   :  { %v839_v4 = vpop.f32.mrf.mxu1 }
 0x8d4   :  { %v2283_v39 = vadd.f32 %v1665_v38, %v839_v4 }
 0x8d6   :  { %v945_v41 = vmul.f32 %v2283_v39, %v2012_v16  ;;  %v880_v47 = vmul.f32 %v2283_v39, %v2053_v28  ;;  %v1062_v7 = vmul.f32 %v2283_v39, %v2059_v30  ;;  %v1152_v21 = vmul.f32 %v2283_v39, %v2093_v52 }
 0x8d7   :  { %v874_v43 = vpop.f32.mrf.mxu2 }
 0x8d8   :  { %949 = vrot.lane.b32.xlu2 %v945_v41, %s1870_s26  ;;  %v875_v50 = vadd.f32 %v1666_v6, %v874_v43 }
 0x8da   :  { %v1002_v55 = vmul.f32 %v1990_v8, %v875_v50  ;;  %v943_v56 = vmul.f32 %v2026_v22, %v875_v50 }
 0x8db   :  { %v842_v44 = vpop.f32.mrf.mxu1 }
 0x8dc   :  { %v2291_v45 = vadd.f32 %v1665_v38, %v842_v44 }
 0x8de   :  { %v946_v48 = vmul.f32 %v2291_v45, %v2012_v16  ;;  %v1209_v16 = vmul.f32 %v2039_v24, %v875_v50  ;;  %v1063_v1 = vmul.f32 %v2291_v45, %v2059_v30  ;;  %v1153_v2 = vmul.f32 %v2291_v45, %v2093_v52 }
 0x8df   :  { %v877_v49 = vpop.f32.mrf.mxu2 }
 0x8e0   :  { %v878_v51 = vadd.f32 %v1666_v6, %v877_v49  ;;  %884 = vrot.lane.b32.xlu2 %v880_v47, %s1870_s26  ;;  %951 = vrot.lane.b32.xlu1 %v946_v48, %s1870_s26 }
 0x8e2   :  { %v1003_v53 = vmul.f32 %v1990_v8, %v878_v51  ;;  %v944_v54 = vmul.f32 %v2026_v22, %v878_v51  ;;  %v1210_v57 = vmul.f32 %v2039_v24, %v878_v51  ;;  %v1120_v60 = vmul.f32 %v2034_v23, %v878_v51 }
 0x8e3   :  { %v1119_v8 = vmul.f32 %v2034_v23, %v875_v50  ;;  %v881_v23 = vmul.f32 %v2291_v45, %v2053_v28 }
 0x8e4   :  { %1024 = vmatpush.msra.mxu1 %v1003_v53  ;;  %1053 = vmatpush.msrb.mxu2 %v944_v54 }
 0x8e6   :  { %1025 = vmatpush.msra.mxu1 %v1002_v55  ;;  %1054 = vmatpush.msrb.mxu2 %v943_v56 }
 0x8e8   :  { %1231 = vmatpush.msra.mxu2 %v1210_v57 }
 0x8ea   :  { %1232 = vmatpush.msra.mxu2 %v1209_v16 }
 0x932   :  { %v950_v59 = vpop.permute.xlu2 %949 }
 0x93a   :  { %v885_v30 = vpop.permute.xlu2 %884 }
 0x952   :  { %v952_v58 = vpop.permute.xlu1 %951 }
 0x953   :  { %1596 = vmatpush.xpose.msk.msra.mxu0 %vm115_vm0, %v952_v58 }
 0x957   :  { %1597 = vmatpush.xpose.msk.msra.mxu0 %vm115_vm0, %v950_v59 }
 0x95a   :  { %1598 = vmatmul.msk.f32.vlgmr.msra.gmra.mxu0 %vm115_vm0, %v2283_v39 }
 0x95b   :  { %1141 = vmatpush.msrb.mxu0 %v1120_v60 }
 0x95d   :  { %1142 = vmatpush.msrb.mxu0 %v1119_v8 }
 0x962   :  { %1599 = vmatmul.msk.f32.gmra.mxu0 %vm115_vm0, %v2291_v45 }
 0x9d7   :  { %v974_v22 = vpop.f32.mrf.mxu0 }
 0x9d8   :  { %v975_v24 = vadd.f32 %v974_v22, %v2079_v42 }
 0x9da   :  { %v980_v61 = vsel %vm227_vm1, %v975_v24, -inf }
 0x9db   :  { %981 = vmax.xlane.f32.xlu0 %v980_v61 }
 0x9df   :  { %v977_v62 = vpop.f32.mrf.mxu0 }
 0x9e0   :  { %v978_v63 = vadd.f32 %v977_v62, %v2083_v46 }
 0x9e2   :  { %v983_v0 = vsel %vm227_vm1, %v978_v63, -inf }
 0x9e3   :  { %984 = vmax.xlane.f32.xlu0 %v983_v0 }
 0x9f7   :  { %886 = vrot.lane.b32.xlu0 %v881_v23, %s1870_s26 }
 0x9ff   :  { %1068 = vrot.lane.b32.xlu0 %v1063_v1, %s1870_s26 }
 0xa07   :  { %1158 = vrot.lane.b32.xlu0 %v1153_v2, %s1870_s26 }
 0xa0f   :  { %1066 = vrot.lane.b32.xlu0 %v1062_v7, %s1870_s26 }
 0xa4e   :  { %v982_v9 = vpop.xlane.xlu0 %981 }
 0xa4f   :  { %v986_v40 = vsub.f32 %v975_v24, %v982_v9 }
 0xa51   :  { %v988_v28 = vmul.f32 1.442695, %v986_v40 }
 0xa53   :  { %1718 = vpow2.f32 %v988_v28 }
 0xa56   :  { %v985_v10 = vpop.xlane.xlu0 %984 }
 0xa57   :  { %v987_v11 = vsub.f32 %v978_v63, %v985_v10 }
 0xa59   :  { %v1719_v12 = vpop.eup %1718  ;;  %v990_v20 = vmul.f32 1.442695, %v987_v11 }
 0xa5a   :  { %v992_v13 = vsel %vm227_vm1, %v1719_v12, 0.0 }
 0xa5b   :  { %1720 = vpow2.f32 %v990_v20  ;;  %993 = vadd.xlane.f32.xlu1 %v992_v13 }
 0xa61   :  { %v1721_v14 = vpop.eup %1720 }
 0xa62   :  { %v995_v15 = vsel %vm227_vm1, %v1721_v14, 0.0 }
 0xa63   :  { %996 = vadd.xlane.f32.xlu2 %v995_v15 }
 0xa69   :  { %v887_v18 = vpop.permute.xlu0 %886 }
 0xa6a   :  { %1592 = vmatpush.xpose.msk.msra.mxu3 %vm115_vm0, %v887_v18 }
 0xa6e   :  { %1593 = vmatpush.xpose.msk.msra.mxu3 %vm115_vm0, %v885_v30 }
 0xa71   :  { %1594 = vmatmul.msk.f32.vlgmr.msra.gmra.mxu3 %vm115_vm0, %v2283_v39  ;;  %v1069_v19 = vpop.permute.xlu0 %1068 }
 0xa72   :  { %1604 = vmatpush.xpose.msk.msrb.mxu3 %vm115_vm0, %v1069_v19 }
 0xa74   :  { %1156 = vrot.lane.b32.xlu1 %v1152_v21, %s1870_s26 }
 0xa79   :  { %1595 = vmatmul.msk.f32.gmra.mxu3 %vm115_vm0, %v2291_v45  ;;  %v1159_v25 = vpop.permute.xlu0 %1158 }
 0xa7a   :  { %1610 = vmatpush.xpose.msk.msrb.mxu1 %vm115_vm0, %v1159_v25 }
 0xa81   :  { %v1067_v3 = vpop.permute.xlu0 %1066 }
 0xa82   :  { %1605 = vmatpush.xpose.msk.msrb.mxu3 %vm115_vm0, %v1067_v3 }
 0xa85   :  { %1606 = vmatmul.msk.f32.vlgmr.msrb.gmra.mxu3 %vm115_vm0, %v2283_v39 }
 0xa8d   :  { %1607 = vmatmul.msk.f32.gmra.mxu3 %vm115_vm0, %v2291_v45 }
 0xace   :  { %v994_v27 = vpop.xlane.xlu1 %993 }
 0xacf   :  { %1722 = vrcp.f32 %v994_v27 }
 0xad5   :  { %v1723_v52 = vpop.eup %1722 }
 0xad6   :  { %v1000_v29 = vmul.f32 %v1723_v52, %v1719_v12  ;;  %v997_v31 = vpop.xlane.xlu2 %996 }
 0xad7   :  { %1724 = vrcp.f32 %v997_v31 }
 0xad8   :  { %1600 = vmatmul.msk.f32.vlgmr.msra.gmra.mxu1 %vm227_vm1, %v1000_v29 }
 0xadd   :  { %v1725_v32 = vpop.eup %1724 }
 0xade   :  { %v1001_v33 = vmul.f32 %v1725_v32, %v1721_v14 }
 0xae0   :  { %1601 = vmatmul.msk.f32.gmra.mxu1 %vm227_vm1, %v1001_v33 }
 0xae6   :  { %v1157_v34 = vpop.permute.xlu1 %1156 }
 0xae7   :  { %1611 = vmatpush.xpose.msk.msrb.mxu1 %vm115_vm0, %v1157_v34 }
 0xaea   :  { %1612 = vmatmul.msk.f32.vlgmr.msrb.gmra.mxu1 %vm115_vm0, %v2283_v39 }
 0xaf2   :  { %1613 = vmatmul.msk.f32.gmra.mxu1 %vm115_vm0, %v2291_v45 }
 0xaf4   :  { %v915_v35 = vpop.f32.mrf.mxu3 }
 0xaf5   :  { %v916_v36 = vadd.f32 %v915_v35, %v2079_v42 }
 0xaf7   :  { %v921_v37 = vsel %vm227_vm1, %v916_v36, -inf }
 0xaf8   :  { %922 = vmax.xlane.f32.xlu0 %v921_v37  ;;  %v1619_v37 = vld [vmem:[%s2494_s7 + $0x38] sm:$0xff] }
 0xaf9   :  { %1266 = vmatpush.msra.mxu3 %v1619_v37 }
 0xafc   :  { %v918_v38 = vpop.f32.mrf.mxu3 }
 0xafd   :  { %v919_v4 = vadd.f32 %v918_v38, %v2083_v46  ;;  %v1618_v38 = vld [vmem:[%s2494_s7 + $0x30] sm:$0xff] }
 0xafe   :  { %1267 = vmatpush.msra.mxu3 %v1618_v38 }
 0xaff   :  { %v924_v41 = vsel %vm227_vm1, %v919_v4, -inf }
 0xb00   :  { %925 = vmax.xlane.f32.xlu2 %v924_v41 }
 0xb08   :  { %v1091_v43 = vpop.f32.mrf.mxu3 }
 0xb09   :  { %v1092_v44 = vadd.f32 %v1091_v43, %v2079_v42 }
 0xb0b   :  { %v1097_v39 = vsel %vm227_vm1, %v1092_v44, -inf }
 0xb0c   :  { %1098 = vmax.xlane.f32.xlu1 %v1097_v39 }
 0xb10   :  { %v1094_v57 = vpop.f32.mrf.mxu3 }
 0xb11   :  { %v1095_v60 = vadd.f32 %v1094_v57, %v2083_v46 }
 0xb13   :  { %v1100_v22 = vsel %vm227_vm1, %v1095_v60, -inf }
 0xb55   :  { %v2360_v6 = vpop.f32.mrf.mxu1 }
 0xb5d   :  { %v2362_v45 = vpop.f32.mrf.mxu1 }
 0xb67   :  { %v1181_v47 = vpop.f32.mrf.mxu1 }
 0xb68   :  { %v1182_v48 = vadd.f32 %v1181_v47, %v2079_v42  ;;  %v1617_v47 = vld [vmem:[%s2494_s7 + $0x28] sm:$0xff] }
 0xb69   :  { %1268 = vmatpush.msra.mxu3 %v1617_v47 }
 0xb6a   :  { %v1187_v49 = vsel %vm227_vm1, %v1182_v48, -inf }
 0xb6b   :  { %1188 = vmax.xlane.f32.xlu2 %v1187_v49  ;;  %v923_v50 = vpop.xlane.xlu0 %922 }
 0xb6c   :  { %v927_v51 = vsub.f32 %v916_v36, %v923_v50 }
 0xb6e   :  { %v929_v53 = vmul.f32 1.442695, %v927_v51 }
 0xb6f   :  { %v1184_v54 = vpop.f32.mrf.mxu1 }
 0xb70   :  { %1726 = vpow2.f32 %v929_v53  ;;  %v1185_v55 = vadd.f32 %v1184_v54, %v2083_v46 }
 0xb72   :  { %v1190_v56 = vsel %vm227_vm1, %v1185_v55, -inf }
 0xb73   :  { %v926_v16 = vpop.xlane.xlu2 %925  ;;  %1191 = vmax.xlane.f32.xlu2 %v1190_v56 }
 0xb74   :  { %v928_v58 = vsub.f32 %v919_v4, %v926_v16 }
 0xb76   :  { %v1727_v59 = vpop.eup %1726  ;;  %v931_v42 = vmul.f32 1.442695, %v928_v58 }
 0xb77   :  { %v933_v8 = vsel %vm227_vm1, %v1727_v59, 0.0 }
 0xb78   :  { %934 = vadd.xlane.f32.xlu0 %v933_v8  ;;  %1728 = vpow2.f32 %v931_v42  ;;  %v1667_v42 = vld [vmem:[%s2498_s11 + $0x9] ss:$0 sm:$0xff] }
 0xb7b   :  { %1101 = vmax.xlane.f32.xlu2 %v1100_v22 }
 0xb7e   :  { %v1729_v24 = vpop.eup %1728 }
 0xb7f   :  { %v1099_v61 = vpop.xlane.xlu1 %1098  ;;  %v936_v0 = vsel %vm227_vm1, %v1729_v24, 0.0 }
 0xb80   :  { %v1103_v62 = vsub.f32 %v1092_v44, %v1099_v61 }
 0xb82   :  { %v1105_v63 = vmul.f32 1.442695, %v1103_v62 }
 0xb83   :  { %937 = vadd.xlane.f32.xlu2 %v936_v0 }
 0xb84   :  { %1730 = vpow2.f32 %v1105_v63 }
 0xb8a   :  { %v1731_v23 = vpop.eup %1730 }
 0xb8b   :  { %v1109_v1 = vsel %vm227_vm1, %v1731_v23, 0.0 }
 0xb8c   :  { %1110 = vadd.xlane.f32.xlu2 %v1109_v1 }
 0xbde   :  { %v1189_v46 = vpop.xlane.xlu2 %1188 }
 0xbdf   :  { %v1193_v2 = vsub.f32 %v1182_v48, %v1189_v46  ;;  %v1616_v48 = vld [vmem:[%s2494_s7 + $0x20] sm:$0xff] }
 0xbe0   :  { %1269 = vmatpush.msra.mxu3 %v1616_v48 }
 0xbe1   :  { %v1195_v7 = vmul.f32 1.442695, %v1193_v2 }
 0xbe3   :  { %1732 = vpow2.f32 %v1195_v7 }
 0xbe6   :  { %v1192_v9 = vpop.xlane.xlu2 %1191 }
 0xbe7   :  { %v1194_v40 = vsub.f32 %v1185_v55, %v1192_v9 }
 0xbe9   :  { %v1733_v28 = vpop.eup %1732  ;;  %v1197_v10 = vmul.f32 1.442695, %v1194_v40 }
 0xbea   :  { %v1199_v11 = vsel %vm227_vm1, %v1733_v28, 0.0 }
 0xbeb   :  { %1734 = vpow2.f32 %v1197_v10  ;;  %1200 = vadd.xlane.f32.xlu0 %v1199_v11  ;;  %v935_v12 = vpop.xlane.xlu0 %934  ;;  %v1332_v10 = vld [vmem:[#allocation7 + $0x30] sm:$0xff]  ;;  %v1331_v11 = vld [vmem:[#allocation7 + $0x28] sm:$0xff] }
 0xbec   :  { %1736 = vrcp.f32 %v935_v12  ;;  %v1330_v12 = vld [vmem:[#allocation7 + $0x20] sm:$0xff] }
 0xbee   :  { %v1102_v20 = vpop.xlane.xlu2 %1101 }
 0xbef   :  { %v1104_v13 = vsub.f32 %v1095_v60, %v1102_v20 }
 0xbf1   :  { %v1735_v14 = vpop.eup %1734  ;;  %v1107_v15 = vmul.f32 1.442695, %v1104_v13 }
 0xbf2   :  { %v1737_v18 = vpop.eup %1736  ;;  %v1202_v30 = vsel %vm227_vm1, %v1735_v14, 0.0 }
 0xbf3   :  { %v941_v19 = vmul.f32 %v1737_v18, %v1727_v59  ;;  %1738 = vpow2.f32 %v1107_v15  ;;  %1203 = vadd.xlane.f32.xlu0 %v1202_v30  ;;  %v1632_v15 = vld [vmem:[%s2497_s10 + $0x78] sm:$0xff]  ;;  %v1631_v18 = vld [vmem:[%s2497_s10 + $0x70] sm:$0xff] }
 0xbf4   :  { %1394 = vmatpush.msra.mxu1 %v1632_v15 }
 0xbf5   :  { %1602 = vmatmul.msk.f32.vlgmr.msrb.gmra.mxu2 %vm227_vm1, %v941_v19  ;;  %v1630_v19 = vld [vmem:[%s2497_s10 + $0x68] sm:$0xff] }
 0xbf6   :  { %v938_v21 = vpop.xlane.xlu2 %937  ;;  %1395 = vmatpush.msra.mxu1 %v1631_v18 }
 0xbf7   :  { %1740 = vrcp.f32 %v938_v21 }
 0xbf8   :  { %1396 = vmatpush.msra.mxu1 %v1630_v19 }
 0xbf9   :  { %v1739_v25 = vpop.eup %1738 }
 0xbfa   :  { %v1112_v3 = vsel %vm227_vm1, %v1739_v25, 0.0 }
 0xbfb   :  { %1113 = vadd.xlane.f32.xlu2 %v1112_v3 }
 0xbfd   :  { %v1741_v27 = vpop.eup %1740 }
 0xbfe   :  { %v942_v52 = vmul.f32 %v1741_v27, %v1729_v24  ;;  %v1629_v27 = vld [vmem:[%s2497_s10 + $0x60] sm:$0xff] }
 0xbff   :  { %v1111_v29 = vpop.xlane.xlu2 %1110  ;;  %1397 = vmatpush.msra.mxu1 %v1629_v27 }
 0xc00   :  { %1742 = vrcp.f32 %v1111_v29  ;;  %1603 = vmatmul.msk.f32.gmra.mxu2 %vm227_vm1, %v942_v52 }
 0xc06   :  { %v1743_v31 = vpop.eup %1742 }
 0xc07   :  { %v1117_v32 = vmul.f32 %v1743_v31, %v1731_v23  ;;  %v1628_v31 = vld [vmem:[%s2497_s10 + $0x58] sm:$0xff] }
 0xc08   :  { %1398 = vmatpush.msra.mxu1 %v1628_v31 }
 0xc09   :  { %1608 = vmatmul.msk.f32.vlgmr.msrb.gmra.mxu0 %vm227_vm1, %v1117_v32 }
 0xc5e   :  { %v1201_v33 = vpop.xlane.xlu0 %1200 }
 0xc5f   :  { %1744 = vrcp.f32 %v1201_v33 }
 0xc65   :  { %v1745_v34 = vpop.eup %1744 }
 0xc66   :  { %v1207_v35 = vmul.f32 %v1745_v34, %v1733_v28  ;;  %v1204_v36 = vpop.xlane.xlu0 %1203 }
 0xc67   :  { %1746 = vrcp.f32 %v1204_v36 }
 0xc68   :  { %1614 = vmatmul.msk.f32.vlgmr.msra.gmra.mxu2 %vm227_vm1, %v1207_v35  ;;  %v1668_v35 = vld [vmem:[%s2498_s11 + $0xb] ss:$0 sm:$0xff] }
 0xc6d   :  { %v1747_v4 = vpop.eup %1746 }
 0xc6e   :  { %v1114_v41 = vpop.xlane.xlu2 %1113  ;;  %v1208_v43 = vmul.f32 %v1747_v4, %v1735_v14  ;;  %v1669_v4 = vld [vmem:[%s2498_s11 + $0xc] ss:$0 sm:$0xff] }
 0xc6f   :  { %1748 = vrcp.f32 %v1114_v41 }
 0xc70   :  { %1615 = vmatmul.msk.f32.gmra.mxu2 %vm227_vm1, %v1208_v43 }
 0xc75   :  { %v1749_v44 = vpop.eup %1748 }
 0xc76   :  { %v1118_v39 = vmul.f32 %v1749_v44, %v1739_v25 }
 0xc78   :  { %1609 = vmatmul.msk.f32.gmra.mxu0 %vm227_vm1, %v1118_v39  ;;  %v1056_v49 = vpop.f32.mrf.mxu2 }
 0xc79   :  { %v1057_v53 = vadd.f32 %v1056_v49, %v2360_v6 }
 0xc83   :  { %v1059_v50 = vpop.f32.mrf.mxu2 }
 0xc84   :  { %v1060_v57 = vadd.f32 %v1059_v50, %v2362_v45 }
 0xc86   :  { %v1144_v51 = vpop.f32.mrf.mxu0 }
 0xc87   :  { %v1150_v54 = vadd.f32 %v1144_v51, %v1057_v53 }
 0xceb   :  { %v1234_v55 = vpop.f32.mrf.mxu2 }
 0xcec   :  { %v1240_v56 = vadd.f32 %v1234_v55, %v1150_v54  ;;  %v1627_v55 = vld [vmem:[%s2497_s10 + $0x50] sm:$0xff] }
 0xced   :  { %1399 = vmatpush.msra.mxu1 %v1627_v55 }
 0xcee   :  { %1620 = vmatmul.msk.f32.vlgmr.msra.gmra.mxu3 %vm115_vm0, %v1240_v56  ;;  %v1626_v56 = vld [vmem:[%s2497_s10 + $0x48] sm:$0xff] }
 0xcef   :  { %1400 = vmatpush.msra.mxu1 %v1626_v56 }
 0xcf3   :  { %v1237_v59 = vpop.f32.mrf.mxu2 }
 0xcf5   :  { %v1147_v16 = vpop.f32.mrf.mxu0 }
 0xcf6   :  { %v1151_v58 = vadd.f32 %v1147_v16, %v1060_v57  ;;  %v1625_v57 = vld [vmem:[%s2497_s10 + $0x40] sm:$0xff] }
 0xcf7   :  { %1401 = vmatpush.msra.mxu1 %v1625_v57  ;;  %v1670_v16 = vld [vmem:[%s2496_s9 + $0x1] ss:$0 sm:$0xff] }
 0xcf8   :  { %v1241_v60 = vadd.f32 %v1237_v59, %v1151_v58 }
 0xcfa   :  { %1621 = vmatmul.msk.f32.gmra.mxu3 %vm115_vm0, %v1241_v60 }
 0xd71   :  { %v1271_v8 = vpop.f32.mrf.mxu3 }
 0xd72   :  { %v1272_v22 = vadd.f32 %v1667_v42, %v1271_v8 }
 0xd74   :  { %v1277_v6 = vadd.f32 %v1272_v22, %v2266_v5 }
 0xd76   :  { %v1279_v24 = vsel %vm115_vm0, %v1277_v6, 0.0 }
 0xd77   :  { %1280 = vadd.xlane.f32.xlu0 %v1279_v24 }
 0xd7d   :  { %v1274_v61 = vpop.f32.mrf.mxu3 }
 0xd7e   :  { %v1275_v62 = vadd.f32 %v1667_v42, %v1274_v61 }
 0xd80   :  { %v1278_v45 = vadd.f32 %v1275_v62, %v2273_v17  ;;  %v1333_v17 = vld [vmem:[#allocation7 + $0x38] sm:$0xff] }
 0xd81   :  { %1357 = vmatpush.msra.mxu0 %v1333_v17 }
 0xd82   :  { %v1282_v63 = vsel %vm115_vm0, %v1278_v45, 0.0 }
 0xd83   :  { %1283 = vadd.xlane.f32.xlu1 %v1282_v63  ;;  %1358 = vmatpush.msra.mxu0 %v1332_v10 }
 0xd85   :  { %1359 = vmatpush.msra.mxu0 %v1331_v11 }
 0xd87   :  { %1360 = vmatpush.msra.mxu0 %v1330_v12 }
 0xdea   :  { %v1281_v0 = vpop.xlane.xlu0 %1280 }
 0xdeb   :  { %v1285_v23 = vmul.f32 %v1281_v0, %v2180_v26 }
 0xded   :  { %v1287_v1 = vsub.f32 %v1277_v6, %v1285_v23  ;;  %v1671_v6 = vld [vmem:[%s2498_s11 + $0xa] ss:$0 sm:$0xff] }
 0xdef   :  { %v1289_v46 = vmul.f32 %v1287_v1, %v1287_v1 }
 0xdf1   :  { %v1291_v2 = vsel %vm115_vm0, %v1289_v46, 0.0 }
 0xdf2   :  { %1292 = vadd.xlane.f32.xlu2 %v1291_v2 }
 0xdf6   :  { %v1284_v7 = vpop.xlane.xlu1 %1283 }
 0xdf7   :  { %v1286_v5 = vmul.f32 %v1284_v7, %v2180_v26 }
 0xdf9   :  { %v1288_v9 = vsub.f32 %v1278_v45, %v1286_v5 }
 0xdfb   :  { %v1290_v40 = vmul.f32 %v1288_v9, %v1288_v9 }
 0xdfd   :  { %v1294_v28 = vsel %vm115_vm0, %v1290_v40, 0.0 }
 0xdfe   :  { %1295 = vadd.xlane.f32.xlu0 %v1294_v28 }
 0xe65   :  { %v1293_v20 = vpop.xlane.xlu2 %1292 }
 0xe66   :  { %v1297_v13 = vmul.f32 %v1293_v20, %v2180_v26 }
 0xe68   :  { %v1299_v14 = vadd.f32 1e-05, %v1297_v13 }
 0xe6a   :  { %1750 = vrsqrt.f32 %v1299_v14  ;;  %vm1307_vm2 = vweird.f32 %v1299_v14 }
 0xe70   :  { %v1751_v30 = vpop.eup %1750 }
 0xe71   :  { %v1302_v21 = vmul.f32 %v1751_v30, %v1299_v14  ;;  %v1296_v25 = vpop.xlane.xlu0 %1295  ;;  %vm1308_vm1 = vweird.f32 %v1751_v30 }
 0xe72   :  { %v1298_v3 = vmul.f32 %v1296_v25, %v2180_v26  ;;  %vm1309_vm3 = vmor %vm1307_vm2, %vm1308_vm1 }
 0xe73   :  { %v1303_v52 = vmul.f32 %v1751_v30, %v1302_v21 }
 0xe74   :  { %v1300_v29 = vadd.f32 1e-05, %v1298_v3 }
 0xe75   :  { %v1304_v32 = vmul.f32 0.5, %v1303_v52  ;;  %v1672_v52 = vld [vmem:[%s2498_s11 + $0xd] ss:$0 sm:$0xff] }
 0xe76   :  { %1752 = vrsqrt.f32 %v1300_v29  ;;  %vm1317_vm5 = vweird.f32 %v1300_v29 }
 0xe77   :  { %v1305_v33 = vsub.f32 1.5, %v1304_v32 }
 0xe79   :  { %v1306_v34 = vmul.f32 %v1751_v30, %v1305_v33  ;;  %v1673_v33 = vld [vmem:[%s2498_s11 + $0xe] ss:$0 sm:$0xff] }
 0xe7b   :  { %v1310_v36 = vsel %vm1309_vm3, %v1751_v30, %v1306_v34 }
 0xe7c   :  { %v1753_v37 = vpop.eup %1752  ;;  %v1321_v38 = vmul.f32 %v1310_v36, %v1287_v1 }
 0xe7d   :  { %v1312_v41 = vmul.f32 %v1753_v37, %v1300_v29  ;;  %vm1318_vm4 = vweird.f32 %v1753_v37 }
 0xe7e   :  { %v1324_v43 = vmul.f32 %v1668_v35, %v1321_v38  ;;  %vm1319_vm6 = vmor %vm1317_vm5, %vm1318_vm4 }
 0xe7f   :  { %v1313_v44 = vmul.f32 %v1753_v37, %v1312_v41 }
 0xe80   :  { %v1327_v39 = vadd.f32 %v1669_v4, %v1324_v43 }
 0xe81   :  { %v1314_v47 = vmul.f32 0.5, %v1313_v44 }
 0xe82   :  { %1623 = vmatmul.msk.f32.vlgmr.msra.gmra.mxu0 %vm115_vm0, %v1327_v39 }
 0xe83   :  { %v1315_v48 = vsub.f32 1.5, %v1314_v47 }
 0xe85   :  { %v1316_v49 = vmul.f32 %v1753_v37, %v1315_v48 }
 0xe87   :  { %v1320_v50 = vsel %vm1319_vm6, %v1753_v37, %v1316_v49 }
 0xe88   :  { %v1322_v51 = vmul.f32 %v1320_v50, %v1288_v9 }
 0xe8a   :  { %v1325_v53 = vmul.f32 %v1668_v35, %v1322_v51 }
 0xe8c   :  { %v1328_v54 = vadd.f32 %v1669_v4, %v1325_v53 }
 0xe8e   :  { %1624 = vmatmul.msk.f32.gmra.mxu0 %vm115_vm0, %v1328_v54 }
 0xeff   :  { %v1362_v58 = vpop.f32.mrf.mxu0 }
 0xf00   :  { %v1363_v59 = vadd.f32 %v1670_v16, %v1362_v58 }
 0xf02   :  { %v1368_v60 = vmax.f32 %v1363_v59, 0.0 }
 0xf04   :  { %1633 = vmatmul.msk.f32.vlgmr.msra.gmra.mxu1 %vm714_vm9, %v1368_v60 }
 0xf0b   :  { %v1365_v42 = vpop.f32.mrf.mxu0 }
 0xf0c   :  { %v1366_v8 = vadd.f32 %v1670_v16, %v1365_v42 }
 0xf0e   :  { %v1369_v22 = vmax.f32 %v1366_v8, 0.0 }
 0xf10   :  { %1634 = vmatmul.msk.f32.gmra.mxu1 %vm714_vm9, %v1369_v22 }
 0xf81   :  { %v1403_v24 = vpop.f32.mrf.mxu1 }
 0xf82   :  { %v1404_v61 = vadd.f32 %v1671_v6, %v1403_v24 }
 0xf84   :  { %v1409_v62 = vadd.f32 %v1404_v61, %v1327_v39 }
 0xf86   :  { %v1411_v45 = vsel %vm115_vm0, %v1409_v62, 0.0 }
 0xf87   :  { %1412 = vadd.xlane.f32.xlu1 %v1411_v45 }
 0xf8d   :  { %v1406_v63 = vpop.f32.mrf.mxu1 }
 0xf8e   :  { %v1407_v0 = vadd.f32 %v1671_v6, %v1406_v63 }
 0xf90   :  { %v1410_v23 = vadd.f32 %v1407_v0, %v1328_v54 }
 0xf92   :  { %v1414_v1 = vsel %vm115_vm0, %v1410_v23, 0.0 }
 0xf93   :  { %1415 = vadd.xlane.f32.xlu2 %v1414_v1  ;;  %v1674_v1 = vld [vmem:[%s2499_s12] ss:$0 sm:$0xff] }
 0xffa   :  { %v1413_v46 = vpop.xlane.xlu1 %1412 }
 0xffb   :  { %v1417_v2 = vmul.f32 %v1413_v46, %v2180_v26 }
 0xffd   :  { %v1419_v7 = vsub.f32 %v1409_v62, %v1417_v2 }
 0xfff   :  { %v1421_v5 = vmul.f32 %v1419_v7, %v1419_v7 }
0x1001   :  { %v1423_v9 = vsel %vm115_vm0, %v1421_v5, 0.0 }
0x1002   :  { %1424 = vadd.xlane.f32.xlu0 %v1423_v9 }
0x1006   :  { %v1416_v40 = vpop.xlane.xlu2 %1415 }
0x1007   :  { %v1418_v28 = vmul.f32 %v1416_v40, %v2180_v26 }
0x1009   :  { %v1420_v17 = vsub.f32 %v1410_v23, %v1418_v28 }
0x100b   :  { %v1422_v10 = vmul.f32 %v1420_v17, %v1420_v17 }
0x100d   :  { %v1426_v11 = vsel %vm115_vm0, %v1422_v10, 0.0 }
0x100e   :  { %1427 = vadd.xlane.f32.xlu1 %v1426_v11 }
0x1075   :  { %v1425_v12 = vpop.xlane.xlu0 %1424 }
0x1076   :  { %v1429_v20 = vmul.f32 %v1425_v12, %v2180_v26 }
0x1078   :  { %v1431_v13 = vadd.f32 1e-05, %v1429_v20 }
0x107a   :  { %1754 = vrsqrt.f32 %v1431_v13  ;;  %vm1439_vm8 = vweird.f32 %v1431_v13 }
0x1080   :  { %v1755_v14 = vpop.eup %1754 }
0x1081   :  { %v1434_v15 = vmul.f32 %v1755_v14, %v1431_v13  ;;  %v1428_v18 = vpop.xlane.xlu1 %1427  ;;  %vm1440_vm7 = vweird.f32 %v1755_v14 }
0x1082   :  { %v1430_v30 = vmul.f32 %v1428_v18, %v2180_v26  ;;  %vm1441_vm9 = vmor %vm1439_vm8, %vm1440_vm7 }
0x1083   :  { %v1435_v19 = vmul.f32 %v1755_v14, %v1434_v15 }
0x1084   :  { %v1432_v21 = vadd.f32 1e-05, %v1430_v30 }
0x1085   :  { %v1436_v25 = vmul.f32 0.5, %v1435_v19 }
0x1086   :  { %1756 = vrsqrt.f32 %v1432_v21  ;;  %vm1449_vm11 = vweird.f32 %v1432_v21 }
0x1087   :  { %v1437_v3 = vsub.f32 1.5, %v1436_v25 }
0x1089   :  { %v1438_v27 = vmul.f32 %v1755_v14, %v1437_v3 }
0x108b   :  { %v1442_v29 = vsel %vm1441_vm9, %v1755_v14, %v1438_v27 }
0x108c   :  { %v1757_v31 = vpop.eup %1756  ;;  %v1453_v32 = vmul.f32 %v1442_v29, %v1419_v7 }
0x108d   :  { %v1444_v34 = vmul.f32 %v1757_v31, %v1432_v21  ;;  %vm1450_vm10 = vweird.f32 %v1757_v31 }
0x108e   :  { %v1456_v35 = vmul.f32 %v1672_v52, %v1453_v32  ;;  %vm1451_vm12 = vmor %vm1449_vm11, %vm1450_vm10 }
0x108f   :  { %v1445_v36 = vmul.f32 %v1757_v31, %v1444_v34 }
0x1090   :  { %v1459_v37 = vadd.f32 %v1673_v33, %v1456_v35 }
0x1091   :  { %v1446_v38 = vmul.f32 0.5, %v1445_v36 }
0x1092   :  { %v1463_v4 = vsel %vm115_vm0, %v1459_v37, 0.0 }
0x1093   :  { %v1447_v41 = vsub.f32 1.5, %v1446_v38  ;;  %1464 = vadd.xlane.f32.xlu2 %v1463_v4 }
0x1095   :  { %v1448_v43 = vmul.f32 %v1757_v31, %v1447_v41 }
0x1097   :  { %v1452_v44 = vsel %vm1451_vm12, %v1757_v31, %v1448_v43 }
0x1098   :  { %v1454_v39 = vmul.f32 %v1452_v44, %v1420_v17 }
0x109a   :  { %v1457_v47 = vmul.f32 %v1672_v52, %v1454_v39 }
0x109c   :  { %v1460_v48 = vadd.f32 %v1673_v33, %v1457_v47 }
0x109e   :  { %v1466_v49 = vsel %vm115_vm0, %v1460_v48, 0.0 }
0x109f   :  { %1467 = vadd.xlane.f32.xlu0 %v1466_v49 }
0x1106   :  { %v1465_v50 = vpop.xlane.xlu2 %1464 }
0x1107   :  { %v1469_v51 = vmul.f32 %v1465_v50, %v2180_v26 }
0x1109   :  { %v1471_v53 = vsub.f32 %v1459_v37, %v1469_v51 }
0x110b   :  { %v1473_v54 = vmul.f32 %v1471_v53, %v1471_v53 }
0x110d   :  { %v1475_v55 = vsel %vm115_vm0, %v1473_v54, 0.0 }
0x110e   :  { %1476 = vadd.xlane.f32.xlu1 %v1475_v55 }
0x1112   :  { %v1468_v56 = vpop.xlane.xlu0 %1467 }
0x1113   :  { %v1470_v57 = vmul.f32 %v1468_v56, %v2180_v26 }
0x1115   :  { %v1472_v16 = vsub.f32 %v1460_v48, %v1470_v57 }
0x1117   :  { %v1474_v58 = vmul.f32 %v1472_v16, %v1472_v16 }
0x1119   :  { %v1478_v59 = vsel %vm115_vm0, %v1474_v58, 0.0 }
0x111a   :  { %1479 = vadd.xlane.f32.xlu2 %v1478_v59 }
0x1181   :  { %v1477_v60 = vpop.xlane.xlu1 %1476 }
0x1182   :  { %v1481_v42 = vmul.f32 %v1477_v60, %v2180_v26 }
0x1184   :  { %v1483_v8 = vadd.f32 1e-05, %v1481_v42 }
0x1186   :  { %1758 = vrsqrt.f32 %v1483_v8  ;;  %vm1491_vm14 = vweird.f32 %v1483_v8 }
0x118c   :  { %v1759_v22 = vpop.eup %1758 }
0x118d   :  { %v1486_v6 = vmul.f32 %v1759_v22, %v1483_v8  ;;  %v1480_v24 = vpop.xlane.xlu2 %1479  ;;  %vm1492_vm13 = vweird.f32 %v1759_v22 }
0x118e   :  { %v1482_v61 = vmul.f32 %v1480_v24, %v2180_v26  ;;  %vm1493_vm15 = vmor %vm1491_vm14, %vm1492_vm13  ;;  %v1675_v26 = vld [vmem:[%s2499_s12 + $0x1] ss:$0 sm:$0xff]  ;;  %s1521_s12 = sshll.u32 %s2500_s13, 4  ;;  %s1522_s12 = int_to_ptr.hbm [resolvable:$true] %s1521_s12 }
0x118f   :  { %v1487_v62 = vmul.f32 %v1759_v22, %v1486_v6 }
0x1190   :  { %v1484_v45 = vadd.f32 1e-05, %v1482_v61 }
0x1191   :  { %v1488_v63 = vmul.f32 0.5, %v1487_v62 }
0x1192   :  { %1760 = vrsqrt.f32 %v1484_v45  ;;  %vm1501_vm2 = vweird.f32 %v1484_v45 }
0x1193   :  { %v1489_v0 = vsub.f32 1.5, %v1488_v63 }
0x1195   :  { %v1490_v23 = vmul.f32 %v1759_v22, %v1489_v0 }
0x1197   :  { %v1494_v46 = vsel %vm1493_vm15, %v1759_v22, %v1490_v23 }
0x1198   :  { %v1761_v2 = vpop.eup %1760  ;;  %v1505_v7 = vmul.f32 %v1494_v46, %v1471_v53 }
0x1199   :  { %v1496_v5 = vmul.f32 %v1761_v2, %v1484_v45  ;;  %vm1502_vm1 = vweird.f32 %v1761_v2 }
0x119a   :  { %v1508_v9 = vmul.f32 %v1674_v1, %v1505_v7  ;;  %vm1503_vm3 = vmor %vm1501_vm2, %vm1502_vm1 }
0x119b   :  { %v1497_v40 = vmul.f32 %v1761_v2, %v1496_v5 }
0x119c   :  { %v1511_v28 = vadd.f32 %v1675_v26, %v1508_v9 }
0x119d   :  { %v1498_v17 = vmul.f32 0.5, %v1497_v40 }
0x119e   :  { %1513 = vst.msk [vmem:[#allocation8] sm:$0xff] %vm115_vm0, %v1511_v28 }
0x119f   :  { %v1499_v10 = vsub.f32 1.5, %v1498_v17 }
0x11a1   :  { %v1500_v11 = vmul.f32 %v1761_v2, %v1499_v10 }
0x11a3   :  { %v1504_v12 = vsel %vm1503_vm3, %v1761_v2, %v1500_v11 }
0x11a4   :  { %v1506_v20 = vmul.f32 %v1504_v12, %v1472_v16 }
0x11a6   :  { %v1509_v13 = vmul.f32 %v1674_v1, %v1506_v20 }
0x11a8   :  { %v1512_v14 = vadd.f32 %v1675_v26, %v1509_v13 }
0x11aa   :  { %1514 = vst.msk [vmem:[#allocation8 + $0x8] sm:$0xff] %vm115_vm0, %v1512_v14 }
0x11ab   :  { %1527 = dma.vmem_to_hbm [thread:$0]  %s1520_s4, 256, %s1522_s12, [#allocation4], %s1865_s16, %s1865_s16, %s1866_s17  }
0x11ac   :  { %1862 = dma.done.wait [#allocation4], 256  }
0x11ad   :  { %1863 = vsyncadd [#allocation4], 4294967040 }
0x11ae   :  { %1532 = vsyncpa [#allocation3], 1 }
0x11af   :  { %1533 = vsyncpa [#allocation6], 1 }
0x11b0   :  { %1534 = vsyncpa [#allocation4], 1 }

</bundles_post_ra>
